<compile_context>
chip_gen: v5e
topology: v5e:2x2
jax: 0.10.0
libtpu: 0.0.40
codegen_flags: <defaults>
</compile_context>

<pallas_src>
import functools

import jax
import jax.numpy as jnp
from jax.experimental import pallas as pl
from jax.experimental.pallas import tpu as pltpu

CHANNELS = 16
SCALE = 4
WIDTH = CHANNELS // SCALE                      # 4
NUMS = SCALE if SCALE == 1 else SCALE - 1      # 3
BN_EPS = 1e-5


def _conv1x1_relu(w_k, inp):
    """relu(w_k @ inp[b]) for every batch row, as WIDTH**2 VPU broadcast FMAs.

    w_k: (WIDTH, WIDTH) [out_ch, in_ch];  inp: (B_BLK, WIDTH, T_TILE) f32.
    Returns (B_BLK, WIDTH, T_TILE) f32.  (No MXU: 4x4 matmuls would waste it.)
    """
    acc = w_k[:, 0][None, :, None] * inp[:, 0:1, :]
    for c in range(1, WIDTH):
        acc = acc + w_k[:, c][None, :, None] * inp[:, c:c + 1, :]
    return jnp.maximum(acc, 0.0)


def res2_kernel(xa_ref, xpass_ref, w_ref, gamma_ref, beta_ref, o_ref,
                ycache_ref, sum_ref, sq_ref, scale_ref, shift_ref, *, n_total):
    # xa_ref:     (B_BLK, WIDTH, T_TILE)  width-chunk s of x (stage s < NUMS)
    # xpass_ref:  (B_BLK, WIDTH, T_TILE)  width-chunk NUMS of x (stage 0 only)
    # w_ref:      (NUMS, WIDTH, WIDTH)    conv weights (tiny, VMEM resident)
    # gamma/beta: (NUMS, WIDTH, 1)        BN affine params
    # o_ref:      (B_BLK, WIDTH, T_TILE)  output chunk selected by the stage
    # ycache_ref: (N_TILES, B_BLK, WIDTH, T_TILE)  persistent relu(conv) cache
    # sum/sq_ref: (NUMS, WIDTH, T_TILE)   lane-partial sum / sum-of-squares
    # scale/shift_ref: (NUMS, WIDTH, 1)   folded BN scale / shift
    s = pl.program_id(0)
    bi = pl.program_id(1)
    ti = pl.program_id(2)
    tile = bi * pl.num_programs(2) + ti
    first_tile = jnp.logical_and(bi == 0, ti == 0)

    def accumulate(j, y):
        # Lane-partial (pure VALU) accumulation; hierarchical over lanes, which
        # also helps the single-pass variance's precision.
        s1 = y[0]
        s2 = y[0] * y[0]
        for b in range(1, y.shape[0]):
            s1 = s1 + y[b]
            s2 = s2 + y[b] * y[b]
        sum_ref[j] = sum_ref[j] + s1
        sq_ref[j] = sq_ref[j] + s2

    def finalize(j):
        # Fold BN (batch stats, biased variance, eps=1e-5) into scale/shift.
        inv_n = 1.0 / n_total
        mean = jnp.sum(sum_ref[j], axis=-1, keepdims=True) * inv_n
        ex2 = jnp.sum(sq_ref[j], axis=-1, keepdims=True) * inv_n
        var = jnp.maximum(ex2 - mean * mean, 0.0)
        sc = gamma_ref[j] * jax.lax.rsqrt(var + BN_EPS)
        scale_ref[j] = sc
        shift_ref[j] = beta_ref[j] - mean * sc

    # ---- stage 0: pass-through split + y_0 + branch-0 stats ------------------
    @pl.when(s == 0)
    def _stage0():
        @pl.when(first_tile)
        def _init():
            sum_ref[...] = jnp.zeros_like(sum_ref)
            sq_ref[...] = jnp.zeros_like(sq_ref)

        o_ref[...] = xpass_ref[...].astype(o_ref.dtype)      # spx[nums] untouched
        y0 = _conv1x1_relu(w_ref[0], xa_ref[...].astype(jnp.float32))
        ycache_ref[tile] = y0
        accumulate(0, y0)

    # ---- stage k (1..NUMS): finalize & emit branch k-1, advance the chain ----
    for k in range(1, NUMS + 1):
        @pl.when(s == k)
        def _stage_k(k=k):
            @pl.when(first_tile)
            def _finalize():
                finalize(k - 1)

            sp = ycache_ref[tile] * scale_ref[k - 1] + shift_ref[k - 1]
            o_ref[...] = sp.astype(o_ref.dtype)              # lane-dense store

            if k < NUMS:
                yk = _conv1x1_relu(w_ref[k], sp + xa_ref[...].astype(jnp.float32))
                ycache_ref[tile] = yk                        # overwrite cache
                accumulate(k, yk)


def _pick_t_tile(t, target=4096):
    """Largest multiple-of-128 divisor of t that is <= target (fallback: t)."""
    if t % 128 != 0:
        return t
    divs = [d for d in range(128, t + 1, 128) if t % d == 0]
    fits = [d for d in divs if d <= target]
    return max(fits) if fits else min(divs)


def _pick_b_blk(b, t_tile, max_b=8, target_bytes=1 << 20):
    """Largest divisor of b (<= max_b) keeping one input block <= ~1 MiB."""
    per_b = WIDTH * t_tile * 4
    best = 1
    for d in range(1, min(b, max_b) + 1):
        if b % d == 0 and d * per_b <= target_bytes:
            best = d
    return best


def _vmem_budget_bytes():
    # TODO(synk): on v7x, split the batch across the two TensorCores (per-core
    # partial BN stats + cross-core reduce) before sizing the resident y-cache.
    try:
        cap = int(pltpu.get_tpu_info().vmem_capacity_bytes)
    except Exception:
        cap = 64 << 20                       # conservative: v7x per-core VMEM
    return max(cap - (8 << 20), 16 << 20)    # headroom for Mosaic internals


def res2conv1d_relu_bn(x_bct, w, gamma, beta, *, t_tile=None, b_blk=None):
    """x_bct: (B, C, T) like PyTorch NCT.  Returns (B, C, T)."""
    B, C, T = x_bct.shape
    assert C == CHANNELS, (C, CHANNELS)
    if t_tile is None:
        t_tile = _pick_t_tile(T)
    assert T % t_tile == 0 and (t_tile == T or t_tile % 128 == 0), (T, t_tile)
    if b_blk is None:
        b_blk = _pick_b_blk(B, t_tile)
    assert B % b_blk == 0, (B, b_blk)
    n_b, n_t = B // b_blk, T // t_tile
    n_tiles = n_b * n_t

    # VMEM footprint (WIDTH=4 pads to 8 sublanes) -> explicit limit + gate.
    pad_w = 8
    ycache_bytes = n_tiles * b_blk * pad_w * t_tile * 4
    stats_bytes = 2 * NUMS * pad_w * t_tile * 4
    io_bytes = 3 * 2 * b_blk * pad_w * t_tile * 4        # xa/xpass/out, double-buffered
    need = ycache_bytes + stats_bytes + io_bytes + (1 << 20)
    budget = _vmem_budget_bytes()
    # TODO(synk): HBM-backed y-cache (manual DMA) fallback for very large B*T.
    assert need <= budget, (need, budget)
    vmem_limit = min(128 << 20, need + (4 << 20))

    x_v = x_bct.reshape(B, SCALE, WIDTH, T)              # free view
    w_v = w.astype(jnp.float32)                          # (NUMS, WIDTH, WIDTH)
    gamma_v = gamma.reshape(NUMS, WIDTH, 1).astype(jnp.float32)
    beta_v = beta.reshape(NUMS, WIDTH, 1).astype(jnp.float32)

    kernel = functools.partial(res2_kernel, n_total=float(B * T))

    last_b, last_t = n_b - 1, n_t - 1

    def xa_map(s, b, t):
        # Stage s < NUMS reads width-chunk s exactly once per (b, t) tile.
        # Stage NUMS needs no fresh x: freeze the block index at the last
        # fetched block so the pipeline elides the DMA (perf-only; harmless
        # if not elided).
        live = s < NUMS
        return (jnp.where(live, b, last_b), jnp.minimum(s, NUMS - 1), 0,
                jnp.where(live, t, last_t))

    def xpass_map(s, b, t):
        # Only stage 0 reads the pass-through chunk; freeze afterwards.
        live = s == 0
        return (jnp.where(live, b, last_b), NUMS, 0, jnp.where(live, t, last_t))

    def out_map(s, b, t):
        # Stage 0 emits the pass-through split (slot NUMS); stage k>=1 emits
        # branch k-1.  Every block is written exactly once, lane-dense.
        return (b, jnp.where(s == 0, NUMS, s - 1), 0, t)

    out = pl.pallas_call(
        kernel,
        out_shape=jax.ShapeDtypeStruct((B, SCALE, WIDTH, T), x_bct.dtype),
        grid=(SCALE, n_b, n_t),                          # (stage, batch blk, T tile)
        in_specs=[
            pl.BlockSpec((b_blk, None, WIDTH, t_tile), xa_map),
            pl.BlockSpec((b_blk, None, WIDTH, t_tile), xpass_map),
            pl.BlockSpec((NUMS, WIDTH, WIDTH), lambda s, b, t: (0, 0, 0)),
            pl.BlockSpec((NUMS, WIDTH, 1), lambda s, b, t: (0, 0, 0)),
            pl.BlockSpec((NUMS, WIDTH, 1), lambda s, b, t: (0, 0, 0)),
        ],
        out_specs=pl.BlockSpec((b_blk, None, WIDTH, t_tile), out_map),
        scratch_shapes=[
            pltpu.VMEM((n_tiles, b_blk, WIDTH, t_tile), jnp.float32),  # y-cache
            pltpu.VMEM((NUMS, WIDTH, t_tile), jnp.float32),            # lane-partial sum
            pltpu.VMEM((NUMS, WIDTH, t_tile), jnp.float32),            # lane-partial sumsq
            pltpu.VMEM((NUMS, WIDTH, 1), jnp.float32),                 # folded BN scale
            pltpu.VMEM((NUMS, WIDTH, 1), jnp.float32),                 # folded BN shift
        ],
        compiler_params=pltpu.CompilerParams(
            # The stage axis is a global stats barrier and the y-cache /
            # accumulators are carried across (batch, T) steps, so every grid
            # axis must remain sequential on one core.
            # TODO(synk): v7x megacore split with a cross-core stats reduce.
            dimension_semantics=("arbitrary", "arbitrary", "arbitrary"),
            vmem_limit_bytes=vmem_limit),
    )(x_v, x_v, w_v, gamma_v, beta_v)
    return out.reshape(B, CHANNELS, T)


def reference(x_bct, w, gamma, beta):
    """Pure-JAX reference mirroring the PyTorch forward exactly."""
    spx = jnp.split(x_bct, SCALE, axis=1)                 # each (B, WIDTH, T)
    outs = []
    sp = None
    for i in range(NUMS):
        inp = spx[i] if i == 0 else sp + spx[i]
        y = jnp.einsum('oc,bct->bot', w[i], inp)          # Conv1d, k=1, no bias
        y = jnp.maximum(y, 0.0)
        mean = jnp.mean(y, axis=(0, 2), keepdims=True)
        var = jnp.mean((y - mean) ** 2, axis=(0, 2), keepdims=True)
        y = (y - mean) * jax.lax.rsqrt(var + BN_EPS)
        y = y * gamma[i].reshape(1, WIDTH, 1) + beta[i].reshape(1, WIDTH, 1)
        outs.append(y)
        sp = y
    outs.append(spx[NUMS])
    return jnp.concatenate(outs, axis=1)


if __name__ == "__main__":
    key = jax.random.PRNGKey(0)
    k_x, k_w, k_g, k_b = jax.random.split(key, 4)

    B, T = 2, 512
    x = jax.random.normal(k_x, (B, CHANNELS, T), dtype=jnp.float32)

    # Synthetic parameters (shapes per the module's __init__):
    #   nums Conv1d(width, width, k=1, bias=False) weights -> (NUMS, WIDTH, WIDTH)
    #   nums BatchNorm1d(width) affine params              -> gamma/beta (NUMS, WIDTH)
    w = jax.random.normal(k_w, (NUMS, WIDTH, WIDTH), dtype=jnp.float32) * 0.3
    gamma = 1.0 + 0.1 * jax.random.normal(k_g, (NUMS, WIDTH), dtype=jnp.float32)
    beta = 0.1 * jax.random.normal(k_b, (NUMS, WIDTH), dtype=jnp.float32)

    ref = reference(x, w, gamma, beta)

    # Config 1: forced small tiles -> exercises the multi-tile grid, cross-tile
    # BN stats, the persistent y-cache and the batch-block axis.
    out1 = jax.block_until_ready(
        res2conv1d_relu_bn(x, w, gamma, beta, t_tile=128, b_blk=1))
    # Config 2: default tiling (large lane-dense blocks, single step per stage).
    out2 = jax.block_until_ready(res2conv1d_relu_bn(x, w, gamma, beta))

    for out in (out1, out2):
        assert out.shape == (B, CHANNELS, T), out.shape
        max_err = float(jnp.max(jnp.abs(out - ref)))
        assert jnp.allclose(out, ref, rtol=1e-4, atol=1e-4), max_err

    print("KERNEL_OK")
</pallas_src>

<mosaic_0001>
module attributes {stable_mosaic.version = 11 : i64} {
  func.func @res2_kernel(%arg0: i32, %arg1: i32, %arg2: i32, %arg3: memref<1x1x4x128xf32, #tpu.memory_space<vmem>>, %arg4: memref<1x1x4x128xf32, #tpu.memory_space<vmem>>, %arg5: memref<3x4x4xf32, #tpu.memory_space<vmem>>, %arg6: memref<3x4x1xf32, #tpu.memory_space<vmem>>, %arg7: memref<3x4x1xf32, #tpu.memory_space<vmem>>, %arg8: memref<1x1x4x128xf32, #tpu.memory_space<vmem>>, %arg9: memref<8x1x4x128xf32, #tpu.memory_space<vmem>>, %arg10: memref<3x4x128xf32, #tpu.memory_space<vmem>>, %arg11: memref<3x4x128xf32, #tpu.memory_space<vmem>>, %arg12: memref<3x4x1xf32, #tpu.memory_space<vmem>>, %arg13: memref<3x4x1xf32, #tpu.memory_space<vmem>>) attributes {dimension_semantics = [#tpu.dimension_semantics<arbitrary>, #tpu.dimension_semantics<arbitrary>, #tpu.dimension_semantics<arbitrary>], iteration_bounds = array<i64: 4, 2, 4>, scalar_prefetch = 0 : i64, scratch_operands = 5 : i64, tpu.core_type = #tpu.core_type<tc>, window_params = [{transform_indices = @transform_0, window_bounds = array<i64: 1, 1, 4, 128>}, {transform_indices = @transform_1, window_bounds = array<i64: 1, 1, 4, 128>}, {pipeline_mode = #tpu.pipeline_mode<synchronous>, transform_indices = @transform_2, window_bounds = array<i64: 3, 4, 4>}, {pipeline_mode = #tpu.pipeline_mode<synchronous>, transform_indices = @transform_3, window_bounds = array<i64: 3, 4, 1>}, {pipeline_mode = #tpu.pipeline_mode<synchronous>, transform_indices = @transform_4, window_bounds = array<i64: 3, 4, 1>}, {transform_indices = @transform_5, window_bounds = array<i64: 1, 1, 4, 128>}]} {
    %c4_i32 = arith.constant 4 : i32
    %0 = arith.muli %arg1, %c4_i32 : i32
    %1 = arith.addi %0, %arg2 : i32
    %c0_i32 = arith.constant 0 : i32
    %2 = arith.cmpi eq, %arg1, %c0_i32 : i32
    %c0_i32_0 = arith.constant 0 : i32
    %3 = arith.cmpi eq, %arg2, %c0_i32_0 : i32
    %4 = arith.andi %2, %3 : i1
    %c0_i32_1 = arith.constant 0 : i32
    %5 = arith.cmpi eq, %arg0, %c0_i32_1 : i32
    %6 = arith.extui %5 : i1 to i32
    %c0_i32_2 = arith.constant 0 : i32
    %7 = arith.cmpi ne, %6, %c0_i32_2 : i32
    scf.if %7 {
      %17 = arith.extui %4 : i1 to i32
      %c0_i32_6 = arith.constant 0 : i32
      %18 = arith.cmpi ne, %17, %c0_i32_6 : i32
      scf.if %18 {
        %cst_36 = arith.constant 0.000000e+00 : f32
        %81 = vector.broadcast %cst_36 : f32 to vector<3x4x128xf32>
        %c0_37 = arith.constant 0 : index
        %c0_38 = arith.constant 0 : index
        %c0_39 = arith.constant 0 : index
        %82 = vector.load %arg10[%c0_37, %c0_38, %c0_39] : memref<3x4x128xf32, #tpu.memory_space<vmem>>, vector<3x4x128xf32>
        tpu.vector_store %arg10[%c0_37, %c0_38, %c0_39], %81 {strides = array<i32>} : memref<3x4x128xf32, #tpu.memory_space<vmem>>, vector<3x4x128xf32>,
        %cst_40 = arith.constant 0.000000e+00 : f32
        %83 = vector.broadcast %cst_40 : f32 to vector<3x4x128xf32>
        %c0_41 = arith.constant 0 : index
        %c0_42 = arith.constant 0 : index
        %c0_43 = arith.constant 0 : index
        %84 = vector.load %arg11[%c0_41, %c0_42, %c0_43] : memref<3x4x128xf32, #tpu.memory_space<vmem>>, vector<3x4x128xf32>
        tpu.vector_store %arg11[%c0_41, %c0_42, %c0_43], %83 {strides = array<i32>} : memref<3x4x128xf32, #tpu.memory_space<vmem>>, vector<3x4x128xf32>,
      } else {
      }
      %c0 = arith.constant 0 : index
      %c0_7 = arith.constant 0 : index
      %c0_8 = arith.constant 0 : index
      %c0_9 = arith.constant 0 : index
      %19 = vector.load %arg4[%c0, %c0_7, %c0_8, %c0_9] : memref<1x1x4x128xf32, #tpu.memory_space<vmem>>, vector<1x1x4x128xf32>
      %20 = vector.shape_cast %19 : vector<1x1x4x128xf32> to vector<1x4x128xf32>
      %c0_10 = arith.constant 0 : index
      %c0_11 = arith.constant 0 : index
      %c0_12 = arith.constant 0 : index
      %c0_13 = arith.constant 0 : index
      %21 = vector.load %arg8[%c0_10, %c0_11, %c0_12, %c0_13] : memref<1x1x4x128xf32, #tpu.memory_space<vmem>>, vector<1x1x4x128xf32>
      %22 = vector.shape_cast %21 : vector<1x1x4x128xf32> to vector<1x4x128xf32>
      %23 = vector.shape_cast %20 : vector<1x4x128xf32> to vector<1x1x4x128xf32>
      tpu.vector_store %arg8[%c0_10, %c0_11, %c0_12, %c0_13], %23 {strides = array<i32>} : memref<1x1x4x128xf32, #tpu.memory_space<vmem>>, vector<1x1x4x128xf32>,
      %c0_14 = arith.constant 0 : index
      %c0_15 = arith.constant 0 : index
      %c0_16 = arith.constant 0 : index
      %24 = vector.load %arg5[%c0_14, %c0_15, %c0_16] : memref<3x4x4xf32, #tpu.memory_space<vmem>>, vector<1x4x4xf32>
      %25 = vector.shape_cast %24 : vector<1x4x4xf32> to vector<4x4xf32>
      %c0_17 = arith.constant 0 : index
      %c0_18 = arith.constant 0 : index
      %c0_19 = arith.constant 0 : index
      %c0_20 = arith.constant 0 : index
      %26 = vector.load %arg3[%c0_17, %c0_18, %c0_19, %c0_20] : memref<1x1x4x128xf32, #tpu.memory_space<vmem>>, vector<1x1x4x128xf32>
      %27 = vector.shape_cast %26 : vector<1x1x4x128xf32> to vector<1x4x128xf32>
      %28 = vector.extract_strided_slice %25 {offsets = [0, 0], sizes = [4, 1], strides = [1, 1]} : vector<4x4xf32> to vector<4x1xf32>
      %29 = vector.shape_cast %28 : vector<4x1xf32> to vector<4xf32>
      %30 = vector.shape_cast %29 : vector<4xf32> to vector<1x4x1xf32>
      %31 = vector.extract_strided_slice %27 {offsets = [0, 0, 0], sizes = [1, 1, 128], strides = [1, 1, 1]} : vector<1x4x128xf32> to vector<1x1x128xf32>
      %32 = vector.broadcast %30 : vector<1x4x1xf32> to vector<1x4x128xf32>
      %33 = vector.broadcast %31 : vector<1x1x128xf32> to vector<1x4x128xf32>
      %34 = arith.mulf %32, %33 : vector<1x4x128xf32>
      %35 = vector.extract_strided_slice %25 {offsets = [0, 1], sizes = [4, 1], strides = [1, 1]} : vector<4x4xf32> to vector<4x1xf32>
      %36 = vector.shape_cast %35 : vector<4x1xf32> to vector<4xf32>
      %37 = vector.shape_cast %36 : vector<4xf32> to vector<1x4x1xf32>
      %38 = vector.extract_strided_slice %27 {offsets = [0, 1, 0], sizes = [1, 1, 128], strides = [1, 1, 1]} : vector<1x4x128xf32> to vector<1x1x128xf32>
      %39 = vector.broadcast %37 : vector<1x4x1xf32> to vector<1x4x128xf32>
      %40 = vector.broadcast %38 : vector<1x1x128xf32> to vector<1x4x128xf32>
      %41 = arith.mulf %39, %40 : vector<1x4x128xf32>
      %42 = arith.addf %34, %41 : vector<1x4x128xf32>
      %43 = vector.extract_strided_slice %25 {offsets = [0, 2], sizes = [4, 1], strides = [1, 1]} : vector<4x4xf32> to vector<4x1xf32>
      %44 = vector.shape_cast %43 : vector<4x1xf32> to vector<4xf32>
      %45 = vector.shape_cast %44 : vector<4xf32> to vector<1x4x1xf32>
      %46 = vector.extract_strided_slice %27 {offsets = [0, 2, 0], sizes = [1, 1, 128], strides = [1, 1, 1]} : vector<1x4x128xf32> to vector<1x1x128xf32>
      %47 = vector.broadcast %45 : vector<1x4x1xf32> to vector<1x4x128xf32>
      %48 = vector.broadcast %46 : vector<1x1x128xf32> to vector<1x4x128xf32>
      %49 = arith.mulf %47, %48 : vector<1x4x128xf32>
      %50 = arith.addf %42, %49 : vector<1x4x128xf32>
      %51 = vector.extract_strided_slice %25 {offsets = [0, 3], sizes = [4, 1], strides = [1, 1]} : vector<4x4xf32> to vector<4x1xf32>
      %52 = vector.shape_cast %51 : vector<4x1xf32> to vector<4xf32>
      %53 = vector.shape_cast %52 : vector<4xf32> to vector<1x4x1xf32>
      %54 = vector.extract_strided_slice %27 {offsets = [0, 3, 0], sizes = [1, 1, 128], strides = [1, 1, 1]} : vector<1x4x128xf32> to vector<1x1x128xf32>
      %55 = vector.broadcast %53 : vector<1x4x1xf32> to vector<1x4x128xf32>
      %56 = vector.broadcast %54 : vector<1x1x128xf32> to vector<1x4x128xf32>
      %57 = arith.mulf %55, %56 : vector<1x4x128xf32>
      %58 = arith.addf %50, %57 : vector<1x4x128xf32>
      %cst = arith.constant 0.000000e+00 : f32
      %59 = vector.broadcast %cst : f32 to vector<1x4x128xf32>
      %60 = arith.maximumf %58, %59 : vector<1x4x128xf32>
      %61 = arith.index_cast %1 : i32 to index
      %c0_21 = arith.constant 0 : index
      %c0_22 = arith.constant 0 : index
      %c0_23 = arith.constant 0 : index
      %62 = vector.load %arg9[%61, %c0_21, %c0_22, %c0_23] : memref<8x1x4x128xf32, #tpu.memory_space<vmem>>, vector<1x1x4x128xf32>
      %63 = vector.shape_cast %62 : vector<1x1x4x128xf32> to vector<1x4x128xf32>
      %64 = vector.shape_cast %60 : vector<1x4x128xf32> to vector<1x1x4x128xf32>
      tpu.vector_store %arg9[%61, %c0_21, %c0_22, %c0_23], %64 {strides = array<i32>} : memref<8x1x4x128xf32, #tpu.memory_space<vmem>>, vector<1x1x4x128xf32>,
      %65 = vector.shape_cast %60 : vector<1x4x128xf32> to vector<4x128xf32>
      %66 = vector.shape_cast %60 : vector<1x4x128xf32> to vector<4x128xf32>
      %67 = vector.shape_cast %60 : vector<1x4x128xf32> to vector<4x128xf32>
      %68 = arith.mulf %66, %67 : vector<4x128xf32>
      %c0_24 = arith.constant 0 : index
      %c0_25 = arith.constant 0 : index
      %c0_26 = arith.constant 0 : index
      %69 = vector.load %arg10[%c0_24, %c0_25, %c0_26] : memref<3x4x128xf32, #tpu.memory_space<vmem>>, vector<1x4x128xf32>
      %70 = vector.shape_cast %69 : vector<1x4x128xf32> to vector<4x128xf32>
      %71 = arith.addf %70, %65 : vector<4x128xf32>
      %c0_27 = arith.constant 0 : index
      %c0_28 = arith.constant 0 : index
      %c0_29 = arith.constant 0 : index
      %72 = vector.load %arg10[%c0_27, %c0_28, %c0_29] : memref<3x4x128xf32, #tpu.memory_space<vmem>>, vector<1x4x128xf32>
      %73 = vector.shape_cast %72 : vector<1x4x128xf32> to vector<4x128xf32>
      %74 = vector.shape_cast %71 : vector<4x128xf32> to vector<1x4x128xf32>
      tpu.vector_store %arg10[%c0_27, %c0_28, %c0_29], %74 {strides = array<i32>} : memref<3x4x128xf32, #tpu.memory_space<vmem>>, vector<1x4x128xf32>,
      %c0_30 = arith.constant 0 : index
      %c0_31 = arith.constant 0 : index
      %c0_32 = arith.constant 0 : index
      %75 = vector.load %arg11[%c0_30, %c0_31, %c0_32] : memref<3x4x128xf32, #tpu.memory_space<vmem>>, vector<1x4x128xf32>
      %76 = vector.shape_cast %75 : vector<1x4x128xf32> to vector<4x128xf32>
      %77 = arith.addf %76, %68 : vector<4x128xf32>
      %c0_33 = arith.constant 0 : index
      %c0_34 = arith.constant 0 : index
      %c0_35 = arith.constant 0 : index
      %78 = vector.load %arg11[%c0_33, %c0_34, %c0_35] : memref<3x4x128xf32, #tpu.memory_space<vmem>>, vector<1x4x128xf32>
      %79 = vector.shape_cast %78 : vector<1x4x128xf32> to vector<4x128xf32>
      %80 = vector.shape_cast %77 : vector<4x128xf32> to vector<1x4x128xf32>
      tpu.vector_store %arg11[%c0_33, %c0_34, %c0_35], %80 {strides = array<i32>} : memref<3x4x128xf32, #tpu.memory_space<vmem>>, vector<1x4x128xf32>,
    } else {
    }
    %c1_i32 = arith.constant 1 : i32
    %8 = arith.cmpi eq, %arg0, %c1_i32 : i32
    %9 = arith.extui %8 : i1 to i32
    %c0_i32_3 = arith.constant 0 : i32
    %10 = arith.cmpi ne, %9, %c0_i32_3 : i32
    scf.if %10 {
      %17 = arith.extui %4 : i1 to i32
      %c0_i32_6 = arith.constant 0 : i32
      %18 = arith.cmpi ne, %17, %c0_i32_6 : i32
      scf.if %18 {
        %c0_40 = arith.constant 0 : index
        %c0_41 = arith.constant 0 : index
        %c0_42 = arith.constant 0 : index
        %93 = vector.load %arg10[%c0_40, %c0_41, %c0_42] : memref<3x4x128xf32, #tpu.memory_space<vmem>>, vector<1x4x128xf32>
        %94 = vector.shape_cast %93 : vector<1x4x128xf32> to vector<4x128xf32>
        %cst_43 = arith.constant dense<0.000000e+00> : vector<4xf32>
        %95 = vector.multi_reduction <add>, %94, %cst_43 [1] : vector<4x128xf32> to vector<4xf32>
        %96 = vector.shape_cast %95 : vector<4xf32> to vector<4x1xf32>
        %cst_44 = arith.constant 9.765625E-4 : f32
        %97 = vector.broadcast %cst_44 : f32 to vector<4x1xf32>
        %98 = arith.mulf %96, %97 : vector<4x1xf32>
        %c0_45 = arith.constant 0 : index
        %c0_46 = arith.constant 0 : index
        %c0_47 = arith.constant 0 : index
        %99 = vector.load %arg11[%c0_45, %c0_46, %c0_47] : memref<3x4x128xf32, #tpu.memory_space<vmem>>, vector<1x4x128xf32>
        %100 = vector.shape_cast %99 : vector<1x4x128xf32> to vector<4x128xf32>
        %cst_48 = arith.constant dense<0.000000e+00> : vector<4xf32>
        %101 = vector.multi_reduction <add>, %100, %cst_48 [1] : vector<4x128xf32> to vector<4xf32>
        %102 = vector.shape_cast %101 : vector<4xf32> to vector<4x1xf32>
        %cst_49 = arith.constant 9.765625E-4 : f32
        %103 = vector.broadcast %cst_49 : f32 to vector<4x1xf32>
        %104 = arith.mulf %102, %103 : vector<4x1xf32>
        %105 = arith.mulf %98, %98 : vector<4x1xf32>
        %106 = arith.subf %104, %105 : vector<4x1xf32>
        %cst_50 = arith.constant 0.000000e+00 : f32
        %107 = vector.broadcast %cst_50 : f32 to vector<4x1xf32>
        %108 = arith.maximumf %106, %107 : vector<4x1xf32>
        %c0_51 = arith.constant 0 : index
        %c0_52 = arith.constant 0 : index
        %c0_53 = arith.constant 0 : index
        %109 = vector.load %arg6[%c0_51, %c0_52, %c0_53] : memref<3x4x1xf32, #tpu.memory_space<vmem>>, vector<1x4x1xf32>
        %110 = vector.shape_cast %109 : vector<1x4x1xf32> to vector<4x1xf32>
        %cst_54 = arith.constant 9.99999974E-6 : f32
        %111 = vector.broadcast %cst_54 : f32 to vector<4x1xf32>
        %112 = arith.addf %108, %111 : vector<4x1xf32>
        %113 = math.rsqrt %112 : vector<4x1xf32>
        %114 = arith.mulf %110, %113 : vector<4x1xf32>
        %c0_55 = arith.constant 0 : index
        %c0_56 = arith.constant 0 : index
        %c0_57 = arith.constant 0 : index
        %115 = vector.load %arg12[%c0_55, %c0_56, %c0_57] : memref<3x4x1xf32, #tpu.memory_space<vmem>>, vector<1x4x1xf32>
        %116 = vector.shape_cast %115 : vector<1x4x1xf32> to vector<4x1xf32>
        %117 = vector.shape_cast %114 : vector<4x1xf32> to vector<1x4x1xf32>
        tpu.vector_store %arg12[%c0_55, %c0_56, %c0_57], %117 {strides = array<i32>} : memref<3x4x1xf32, #tpu.memory_space<vmem>>, vector<1x4x1xf32>,
        %c0_58 = arith.constant 0 : index
        %c0_59 = arith.constant 0 : index
        %c0_60 = arith.constant 0 : index
        %118 = vector.load %arg7[%c0_58, %c0_59, %c0_60] : memref<3x4x1xf32, #tpu.memory_space<vmem>>, vector<1x4x1xf32>
        %119 = vector.shape_cast %118 : vector<1x4x1xf32> to vector<4x1xf32>
        %120 = arith.mulf %98, %114 : vector<4x1xf32>
        %121 = arith.subf %119, %120 : vector<4x1xf32>
        %c0_61 = arith.constant 0 : index
        %c0_62 = arith.constant 0 : index
        %c0_63 = arith.constant 0 : index
        %122 = vector.load %arg13[%c0_61, %c0_62, %c0_63] : memref<3x4x1xf32, #tpu.memory_space<vmem>>, vector<1x4x1xf32>
        %123 = vector.shape_cast %122 : vector<1x4x1xf32> to vector<4x1xf32>
        %124 = vector.shape_cast %121 : vector<4x1xf32> to vector<1x4x1xf32>
        tpu.vector_store %arg13[%c0_61, %c0_62, %c0_63], %124 {strides = array<i32>} : memref<3x4x1xf32, #tpu.memory_space<vmem>>, vector<1x4x1xf32>,
      } else {
      }
      %19 = arith.index_cast %1 : i32 to index
      %c0 = arith.constant 0 : index
      %c0_7 = arith.constant 0 : index
      %c0_8 = arith.constant 0 : index
      %20 = vector.load %arg9[%19, %c0, %c0_7, %c0_8] : memref<8x1x4x128xf32, #tpu.memory_space<vmem>>, vector<1x1x4x128xf32>
      %21 = vector.shape_cast %20 : vector<1x1x4x128xf32> to vector<1x4x128xf32>
      %c0_9 = arith.constant 0 : index
      %c0_10 = arith.constant 0 : index
      %c0_11 = arith.constant 0 : index
      %22 = vector.load %arg12[%c0_9, %c0_10, %c0_11] : memref<3x4x1xf32, #tpu.memory_space<vmem>>, vector<1x4x1xf32>
      %23 = vector.shape_cast %22 : vector<1x4x1xf32> to vector<4x1xf32>
      %24 = vector.shape_cast %23 : vector<4x1xf32> to vector<1x4x1xf32>
      %25 = vector.broadcast %24 : vector<1x4x1xf32> to vector<1x4x128xf32>
      %26 = arith.mulf %21, %25 : vector<1x4x128xf32>
      %c0_12 = arith.constant 0 : index
      %c0_13 = arith.constant 0 : index
      %c0_14 = arith.constant 0 : index
      %27 = vector.load %arg13[%c0_12, %c0_13, %c0_14] : memref<3x4x1xf32, #tpu.memory_space<vmem>>, vector<1x4x1xf32>
      %28 = vector.shape_cast %27 : vector<1x4x1xf32> to vector<4x1xf32>
      %29 = vector.shape_cast %28 : vector<4x1xf32> to vector<1x4x1xf32>
      %30 = vector.broadcast %29 : vector<1x4x1xf32> to vector<1x4x128xf32>
      %31 = arith.addf %26, %30 : vector<1x4x128xf32>
      %c0_15 = arith.constant 0 : index
      %c0_16 = arith.constant 0 : index
      %c0_17 = arith.constant 0 : index
      %c0_18 = arith.constant 0 : index
      %32 = vector.load %arg8[%c0_15, %c0_16, %c0_17, %c0_18] : memref<1x1x4x128xf32, #tpu.memory_space<vmem>>, vector<1x1x4x128xf32>
      %33 = vector.shape_cast %32 : vector<1x1x4x128xf32> to vector<1x4x128xf32>
      %34 = vector.shape_cast %31 : vector<1x4x128xf32> to vector<1x1x4x128xf32>
      tpu.vector_store %arg8[%c0_15, %c0_16, %c0_17, %c0_18], %34 {strides = array<i32>} : memref<1x1x4x128xf32, #tpu.memory_space<vmem>>, vector<1x1x4x128xf32>,
      %c1 = arith.constant 1 : index
      %c0_19 = arith.constant 0 : index
      %c0_20 = arith.constant 0 : index
      %35 = vector.load %arg5[%c1, %c0_19, %c0_20] : memref<3x4x4xf32, #tpu.memory_space<vmem>>, vector<1x4x4xf32>
      %36 = vector.shape_cast %35 : vector<1x4x4xf32> to vector<4x4xf32>
      %c0_21 = arith.constant 0 : index
      %c0_22 = arith.constant 0 : index
      %c0_23 = arith.constant 0 : index
      %c0_24 = arith.constant 0 : index
      %37 = vector.load %arg3[%c0_21, %c0_22, %c0_23, %c0_24] : memref<1x1x4x128xf32, #tpu.memory_space<vmem>>, vector<1x1x4x128xf32>
      %38 = vector.shape_cast %37 : vector<1x1x4x128xf32> to vector<1x4x128xf32>
      %39 = arith.addf %31, %38 : vector<1x4x128xf32>
      %40 = vector.extract_strided_slice %36 {offsets = [0, 0], sizes = [4, 1], strides = [1, 1]} : vector<4x4xf32> to vector<4x1xf32>
      %41 = vector.shape_cast %40 : vector<4x1xf32> to vector<4xf32>
      %42 = vector.shape_cast %41 : vector<4xf32> to vector<1x4x1xf32>
      %43 = vector.extract_strided_slice %39 {offsets = [0, 0, 0], sizes = [1, 1, 128], strides = [1, 1, 1]} : vector<1x4x128xf32> to vector<1x1x128xf32>
      %44 = vector.broadcast %42 : vector<1x4x1xf32> to vector<1x4x128xf32>
      %45 = vector.broadcast %43 : vector<1x1x128xf32> to vector<1x4x128xf32>
      %46 = arith.mulf %44, %45 : vector<1x4x128xf32>
      %47 = vector.extract_strided_slice %36 {offsets = [0, 1], sizes = [4, 1], strides = [1, 1]} : vector<4x4xf32> to vector<4x1xf32>
      %48 = vector.shape_cast %47 : vector<4x1xf32> to vector<4xf32>
      %49 = vector.shape_cast %48 : vector<4xf32> to vector<1x4x1xf32>
      %50 = vector.extract_strided_slice %39 {offsets = [0, 1, 0], sizes = [1, 1, 128], strides = [1, 1, 1]} : vector<1x4x128xf32> to vector<1x1x128xf32>
      %51 = vector.broadcast %49 : vector<1x4x1xf32> to vector<1x4x128xf32>
      %52 = vector.broadcast %50 : vector<1x1x128xf32> to vector<1x4x128xf32>
      %53 = arith.mulf %51, %52 : vector<1x4x128xf32>
      %54 = arith.addf %46, %53 : vector<1x4x128xf32>
      %55 = vector.extract_strided_slice %36 {offsets = [0, 2], sizes = [4, 1], strides = [1, 1]} : vector<4x4xf32> to vector<4x1xf32>
      %56 = vector.shape_cast %55 : vector<4x1xf32> to vector<4xf32>
      %57 = vector.shape_cast %56 : vector<4xf32> to vector<1x4x1xf32>
      %58 = vector.extract_strided_slice %39 {offsets = [0, 2, 0], sizes = [1, 1, 128], strides = [1, 1, 1]} : vector<1x4x128xf32> to vector<1x1x128xf32>
      %59 = vector.broadcast %57 : vector<1x4x1xf32> to vector<1x4x128xf32>
      %60 = vector.broadcast %58 : vector<1x1x128xf32> to vector<1x4x128xf32>
      %61 = arith.mulf %59, %60 : vector<1x4x128xf32>
      %62 = arith.addf %54, %61 : vector<1x4x128xf32>
      %63 = vector.extract_strided_slice %36 {offsets = [0, 3], sizes = [4, 1], strides = [1, 1]} : vector<4x4xf32> to vector<4x1xf32>
      %64 = vector.shape_cast %63 : vector<4x1xf32> to vector<4xf32>
      %65 = vector.shape_cast %64 : vector<4xf32> to vector<1x4x1xf32>
      %66 = vector.extract_strided_slice %39 {offsets = [0, 3, 0], sizes = [1, 1, 128], strides = [1, 1, 1]} : vector<1x4x128xf32> to vector<1x1x128xf32>
      %67 = vector.broadcast %65 : vector<1x4x1xf32> to vector<1x4x128xf32>
      %68 = vector.broadcast %66 : vector<1x1x128xf32> to vector<1x4x128xf32>
      %69 = arith.mulf %67, %68 : vector<1x4x128xf32>
      %70 = arith.addf %62, %69 : vector<1x4x128xf32>
      %cst = arith.constant 0.000000e+00 : f32
      %71 = vector.broadcast %cst : f32 to vector<1x4x128xf32>
      %72 = arith.maximumf %70, %71 : vector<1x4x128xf32>
      %73 = arith.index_cast %1 : i32 to index
      %c0_25 = arith.constant 0 : index
      %c0_26 = arith.constant 0 : index
      %c0_27 = arith.constant 0 : index
      %74 = vector.load %arg9[%73, %c0_25, %c0_26, %c0_27] : memref<8x1x4x128xf32, #tpu.memory_space<vmem>>, vector<1x1x4x128xf32>
      %75 = vector.shape_cast %74 : vector<1x1x4x128xf32> to vector<1x4x128xf32>
      %76 = vector.shape_cast %72 : vector<1x4x128xf32> to vector<1x1x4x128xf32>
      tpu.vector_store %arg9[%73, %c0_25, %c0_26, %c0_27], %76 {strides = array<i32>} : memref<8x1x4x128xf32, #tpu.memory_space<vmem>>, vector<1x1x4x128xf32>,
      %77 = vector.shape_cast %72 : vector<1x4x128xf32> to vector<4x128xf32>
      %78 = vector.shape_cast %72 : vector<1x4x128xf32> to vector<4x128xf32>
      %79 = vector.shape_cast %72 : vector<1x4x128xf32> to vector<4x128xf32>
      %80 = arith.mulf %78, %79 : vector<4x128xf32>
      %c1_28 = arith.constant 1 : index
      %c0_29 = arith.constant 0 : index
      %c0_30 = arith.constant 0 : index
      %81 = vector.load %arg10[%c1_28, %c0_29, %c0_30] : memref<3x4x128xf32, #tpu.memory_space<vmem>>, vector<1x4x128xf32>
      %82 = vector.shape_cast %81 : vector<1x4x128xf32> to vector<4x128xf32>
      %83 = arith.addf %82, %77 : vector<4x128xf32>
      %c1_31 = arith.constant 1 : index
      %c0_32 = arith.constant 0 : index
      %c0_33 = arith.constant 0 : index
      %84 = vector.load %arg10[%c1_31, %c0_32, %c0_33] : memref<3x4x128xf32, #tpu.memory_space<vmem>>, vector<1x4x128xf32>
      %85 = vector.shape_cast %84 : vector<1x4x128xf32> to vector<4x128xf32>
      %86 = vector.shape_cast %83 : vector<4x128xf32> to vector<1x4x128xf32>
      tpu.vector_store %arg10[%c1_31, %c0_32, %c0_33], %86 {strides = array<i32>} : memref<3x4x128xf32, #tpu.memory_space<vmem>>, vector<1x4x128xf32>,
      %c1_34 = arith.constant 1 : index
      %c0_35 = arith.constant 0 : index
      %c0_36 = arith.constant 0 : index
      %87 = vector.load %arg11[%c1_34, %c0_35, %c0_36] : memref<3x4x128xf32, #tpu.memory_space<vmem>>, vector<1x4x128xf32>
      %88 = vector.shape_cast %87 : vector<1x4x128xf32> to vector<4x128xf32>
      %89 = arith.addf %88, %80 : vector<4x128xf32>
      %c1_37 = arith.constant 1 : index
      %c0_38 = arith.constant 0 : index
      %c0_39 = arith.constant 0 : index
      %90 = vector.load %arg11[%c1_37, %c0_38, %c0_39] : memref<3x4x128xf32, #tpu.memory_space<vmem>>, vector<1x4x128xf32>
      %91 = vector.shape_cast %90 : vector<1x4x128xf32> to vector<4x128xf32>
      %92 = vector.shape_cast %89 : vector<4x128xf32> to vector<1x4x128xf32>
      tpu.vector_store %arg11[%c1_37, %c0_38, %c0_39], %92 {strides = array<i32>} : memref<3x4x128xf32, #tpu.memory_space<vmem>>, vector<1x4x128xf32>,
    } else {
    }
    %c2_i32 = arith.constant 2 : i32
    %11 = arith.cmpi eq, %arg0, %c2_i32 : i32
    %12 = arith.extui %11 : i1 to i32
    %c0_i32_4 = arith.constant 0 : i32
    %13 = arith.cmpi ne, %12, %c0_i32_4 : i32
    scf.if %13 {
      %17 = arith.extui %4 : i1 to i32
      %c0_i32_6 = arith.constant 0 : i32
      %18 = arith.cmpi ne, %17, %c0_i32_6 : i32
      scf.if %18 {
        %c1_39 = arith.constant 1 : index
        %c0_40 = arith.constant 0 : index
        %c0_41 = arith.constant 0 : index
        %93 = vector.load %arg10[%c1_39, %c0_40, %c0_41] : memref<3x4x128xf32, #tpu.memory_space<vmem>>, vector<1x4x128xf32>
        %94 = vector.shape_cast %93 : vector<1x4x128xf32> to vector<4x128xf32>
        %cst_42 = arith.constant dense<0.000000e+00> : vector<4xf32>
        %95 = vector.multi_reduction <add>, %94, %cst_42 [1] : vector<4x128xf32> to vector<4xf32>
        %96 = vector.shape_cast %95 : vector<4xf32> to vector<4x1xf32>
        %cst_43 = arith.constant 9.765625E-4 : f32
        %97 = vector.broadcast %cst_43 : f32 to vector<4x1xf32>
        %98 = arith.mulf %96, %97 : vector<4x1xf32>
        %c1_44 = arith.constant 1 : index
        %c0_45 = arith.constant 0 : index
        %c0_46 = arith.constant 0 : index
        %99 = vector.load %arg11[%c1_44, %c0_45, %c0_46] : memref<3x4x128xf32, #tpu.memory_space<vmem>>, vector<1x4x128xf32>
        %100 = vector.shape_cast %99 : vector<1x4x128xf32> to vector<4x128xf32>
        %cst_47 = arith.constant dense<0.000000e+00> : vector<4xf32>
        %101 = vector.multi_reduction <add>, %100, %cst_47 [1] : vector<4x128xf32> to vector<4xf32>
        %102 = vector.shape_cast %101 : vector<4xf32> to vector<4x1xf32>
        %cst_48 = arith.constant 9.765625E-4 : f32
        %103 = vector.broadcast %cst_48 : f32 to vector<4x1xf32>
        %104 = arith.mulf %102, %103 : vector<4x1xf32>
        %105 = arith.mulf %98, %98 : vector<4x1xf32>
        %106 = arith.subf %104, %105 : vector<4x1xf32>
        %cst_49 = arith.constant 0.000000e+00 : f32
        %107 = vector.broadcast %cst_49 : f32 to vector<4x1xf32>
        %108 = arith.maximumf %106, %107 : vector<4x1xf32>
        %c1_50 = arith.constant 1 : index
        %c0_51 = arith.constant 0 : index
        %c0_52 = arith.constant 0 : index
        %109 = vector.load %arg6[%c1_50, %c0_51, %c0_52] : memref<3x4x1xf32, #tpu.memory_space<vmem>>, vector<1x4x1xf32>
        %110 = vector.shape_cast %109 : vector<1x4x1xf32> to vector<4x1xf32>
        %cst_53 = arith.constant 9.99999974E-6 : f32
        %111 = vector.broadcast %cst_53 : f32 to vector<4x1xf32>
        %112 = arith.addf %108, %111 : vector<4x1xf32>
        %113 = math.rsqrt %112 : vector<4x1xf32>
        %114 = arith.mulf %110, %113 : vector<4x1xf32>
        %c1_54 = arith.constant 1 : index
        %c0_55 = arith.constant 0 : index
        %c0_56 = arith.constant 0 : index
        %115 = vector.load %arg12[%c1_54, %c0_55, %c0_56] : memref<3x4x1xf32, #tpu.memory_space<vmem>>, vector<1x4x1xf32>
        %116 = vector.shape_cast %115 : vector<1x4x1xf32> to vector<4x1xf32>
        %117 = vector.shape_cast %114 : vector<4x1xf32> to vector<1x4x1xf32>
        tpu.vector_store %arg12[%c1_54, %c0_55, %c0_56], %117 {strides = array<i32>} : memref<3x4x1xf32, #tpu.memory_space<vmem>>, vector<1x4x1xf32>,
        %c1_57 = arith.constant 1 : index
        %c0_58 = arith.constant 0 : index
        %c0_59 = arith.constant 0 : index
        %118 = vector.load %arg7[%c1_57, %c0_58, %c0_59] : memref<3x4x1xf32, #tpu.memory_space<vmem>>, vector<1x4x1xf32>
        %119 = vector.shape_cast %118 : vector<1x4x1xf32> to vector<4x1xf32>
        %120 = arith.mulf %98, %114 : vector<4x1xf32>
        %121 = arith.subf %119, %120 : vector<4x1xf32>
        %c1_60 = arith.constant 1 : index
        %c0_61 = arith.constant 0 : index
        %c0_62 = arith.constant 0 : index
        %122 = vector.load %arg13[%c1_60, %c0_61, %c0_62] : memref<3x4x1xf32, #tpu.memory_space<vmem>>, vector<1x4x1xf32>
        %123 = vector.shape_cast %122 : vector<1x4x1xf32> to vector<4x1xf32>
        %124 = vector.shape_cast %121 : vector<4x1xf32> to vector<1x4x1xf32>
        tpu.vector_store %arg13[%c1_60, %c0_61, %c0_62], %124 {strides = array<i32>} : memref<3x4x1xf32, #tpu.memory_space<vmem>>, vector<1x4x1xf32>,
      } else {
      }
      %19 = arith.index_cast %1 : i32 to index
      %c0 = arith.constant 0 : index
      %c0_7 = arith.constant 0 : index
      %c0_8 = arith.constant 0 : index
      %20 = vector.load %arg9[%19, %c0, %c0_7, %c0_8] : memref<8x1x4x128xf32, #tpu.memory_space<vmem>>, vector<1x1x4x128xf32>
      %21 = vector.shape_cast %20 : vector<1x1x4x128xf32> to vector<1x4x128xf32>
      %c1 = arith.constant 1 : index
      %c0_9 = arith.constant 0 : index
      %c0_10 = arith.constant 0 : index
      %22 = vector.load %arg12[%c1, %c0_9, %c0_10] : memref<3x4x1xf32, #tpu.memory_space<vmem>>, vector<1x4x1xf32>
      %23 = vector.shape_cast %22 : vector<1x4x1xf32> to vector<4x1xf32>
      %24 = vector.shape_cast %23 : vector<4x1xf32> to vector<1x4x1xf32>
      %25 = vector.broadcast %24 : vector<1x4x1xf32> to vector<1x4x128xf32>
      %26 = arith.mulf %21, %25 : vector<1x4x128xf32>
      %c1_11 = arith.constant 1 : index
      %c0_12 = arith.constant 0 : index
      %c0_13 = arith.constant 0 : index
      %27 = vector.load %arg13[%c1_11, %c0_12, %c0_13] : memref<3x4x1xf32, #tpu.memory_space<vmem>>, vector<1x4x1xf32>
      %28 = vector.shape_cast %27 : vector<1x4x1xf32> to vector<4x1xf32>
      %29 = vector.shape_cast %28 : vector<4x1xf32> to vector<1x4x1xf32>
      %30 = vector.broadcast %29 : vector<1x4x1xf32> to vector<1x4x128xf32>
      %31 = arith.addf %26, %30 : vector<1x4x128xf32>
      %c0_14 = arith.constant 0 : index
      %c0_15 = arith.constant 0 : index
      %c0_16 = arith.constant 0 : index
      %c0_17 = arith.constant 0 : index
      %32 = vector.load %arg8[%c0_14, %c0_15, %c0_16, %c0_17] : memref<1x1x4x128xf32, #tpu.memory_space<vmem>>, vector<1x1x4x128xf32>
      %33 = vector.shape_cast %32 : vector<1x1x4x128xf32> to vector<1x4x128xf32>
      %34 = vector.shape_cast %31 : vector<1x4x128xf32> to vector<1x1x4x128xf32>
      tpu.vector_store %arg8[%c0_14, %c0_15, %c0_16, %c0_17], %34 {strides = array<i32>} : memref<1x1x4x128xf32, #tpu.memory_space<vmem>>, vector<1x1x4x128xf32>,
      %c2 = arith.constant 2 : index
      %c0_18 = arith.constant 0 : index
      %c0_19 = arith.constant 0 : index
      %35 = vector.load %arg5[%c2, %c0_18, %c0_19] : memref<3x4x4xf32, #tpu.memory_space<vmem>>, vector<1x4x4xf32>
      %36 = vector.shape_cast %35 : vector<1x4x4xf32> to vector<4x4xf32>
      %c0_20 = arith.constant 0 : index
      %c0_21 = arith.constant 0 : index
      %c0_22 = arith.constant 0 : index
      %c0_23 = arith.constant 0 : index
      %37 = vector.load %arg3[%c0_20, %c0_21, %c0_22, %c0_23] : memref<1x1x4x128xf32, #tpu.memory_space<vmem>>, vector<1x1x4x128xf32>
      %38 = vector.shape_cast %37 : vector<1x1x4x128xf32> to vector<1x4x128xf32>
      %39 = arith.addf %31, %38 : vector<1x4x128xf32>
      %40 = vector.extract_strided_slice %36 {offsets = [0, 0], sizes = [4, 1], strides = [1, 1]} : vector<4x4xf32> to vector<4x1xf32>
      %41 = vector.shape_cast %40 : vector<4x1xf32> to vector<4xf32>
      %42 = vector.shape_cast %41 : vector<4xf32> to vector<1x4x1xf32>
      %43 = vector.extract_strided_slice %39 {offsets = [0, 0, 0], sizes = [1, 1, 128], strides = [1, 1, 1]} : vector<1x4x128xf32> to vector<1x1x128xf32>
      %44 = vector.broadcast %42 : vector<1x4x1xf32> to vector<1x4x128xf32>
      %45 = vector.broadcast %43 : vector<1x1x128xf32> to vector<1x4x128xf32>
      %46 = arith.mulf %44, %45 : vector<1x4x128xf32>
      %47 = vector.extract_strided_slice %36 {offsets = [0, 1], sizes = [4, 1], strides = [1, 1]} : vector<4x4xf32> to vector<4x1xf32>
      %48 = vector.shape_cast %47 : vector<4x1xf32> to vector<4xf32>
      %49 = vector.shape_cast %48 : vector<4xf32> to vector<1x4x1xf32>
      %50 = vector.extract_strided_slice %39 {offsets = [0, 1, 0], sizes = [1, 1, 128], strides = [1, 1, 1]} : vector<1x4x128xf32> to vector<1x1x128xf32>
      %51 = vector.broadcast %49 : vector<1x4x1xf32> to vector<1x4x128xf32>
      %52 = vector.broadcast %50 : vector<1x1x128xf32> to vector<1x4x128xf32>
      %53 = arith.mulf %51, %52 : vector<1x4x128xf32>
      %54 = arith.addf %46, %53 : vector<1x4x128xf32>
      %55 = vector.extract_strided_slice %36 {offsets = [0, 2], sizes = [4, 1], strides = [1, 1]} : vector<4x4xf32> to vector<4x1xf32>
      %56 = vector.shape_cast %55 : vector<4x1xf32> to vector<4xf32>
      %57 = vector.shape_cast %56 : vector<4xf32> to vector<1x4x1xf32>
      %58 = vector.extract_strided_slice %39 {offsets = [0, 2, 0], sizes = [1, 1, 128], strides = [1, 1, 1]} : vector<1x4x128xf32> to vector<1x1x128xf32>
      %59 = vector.broadcast %57 : vector<1x4x1xf32> to vector<1x4x128xf32>
      %60 = vector.broadcast %58 : vector<1x1x128xf32> to vector<1x4x128xf32>
      %61 = arith.mulf %59, %60 : vector<1x4x128xf32>
      %62 = arith.addf %54, %61 : vector<1x4x128xf32>
      %63 = vector.extract_strided_slice %36 {offsets = [0, 3], sizes = [4, 1], strides = [1, 1]} : vector<4x4xf32> to vector<4x1xf32>
      %64 = vector.shape_cast %63 : vector<4x1xf32> to vector<4xf32>
      %65 = vector.shape_cast %64 : vector<4xf32> to vector<1x4x1xf32>
      %66 = vector.extract_strided_slice %39 {offsets = [0, 3, 0], sizes = [1, 1, 128], strides = [1, 1, 1]} : vector<1x4x128xf32> to vector<1x1x128xf32>
      %67 = vector.broadcast %65 : vector<1x4x1xf32> to vector<1x4x128xf32>
      %68 = vector.broadcast %66 : vector<1x1x128xf32> to vector<1x4x128xf32>
      %69 = arith.mulf %67, %68 : vector<1x4x128xf32>
      %70 = arith.addf %62, %69 : vector<1x4x128xf32>
      %cst = arith.constant 0.000000e+00 : f32
      %71 = vector.broadcast %cst : f32 to vector<1x4x128xf32>
      %72 = arith.maximumf %70, %71 : vector<1x4x128xf32>
      %73 = arith.index_cast %1 : i32 to index
      %c0_24 = arith.constant 0 : index
      %c0_25 = arith.constant 0 : index
      %c0_26 = arith.constant 0 : index
      %74 = vector.load %arg9[%73, %c0_24, %c0_25, %c0_26] : memref<8x1x4x128xf32, #tpu.memory_space<vmem>>, vector<1x1x4x128xf32>
      %75 = vector.shape_cast %74 : vector<1x1x4x128xf32> to vector<1x4x128xf32>
      %76 = vector.shape_cast %72 : vector<1x4x128xf32> to vector<1x1x4x128xf32>
      tpu.vector_store %arg9[%73, %c0_24, %c0_25, %c0_26], %76 {strides = array<i32>} : memref<8x1x4x128xf32, #tpu.memory_space<vmem>>, vector<1x1x4x128xf32>,
      %77 = vector.shape_cast %72 : vector<1x4x128xf32> to vector<4x128xf32>
      %78 = vector.shape_cast %72 : vector<1x4x128xf32> to vector<4x128xf32>
      %79 = vector.shape_cast %72 : vector<1x4x128xf32> to vector<4x128xf32>
      %80 = arith.mulf %78, %79 : vector<4x128xf32>
      %c2_27 = arith.constant 2 : index
      %c0_28 = arith.constant 0 : index
      %c0_29 = arith.constant 0 : index
      %81 = vector.load %arg10[%c2_27, %c0_28, %c0_29] : memref<3x4x128xf32, #tpu.memory_space<vmem>>, vector<1x4x128xf32>
      %82 = vector.shape_cast %81 : vector<1x4x128xf32> to vector<4x128xf32>
      %83 = arith.addf %82, %77 : vector<4x128xf32>
      %c2_30 = arith.constant 2 : index
      %c0_31 = arith.constant 0 : index
      %c0_32 = arith.constant 0 : index
      %84 = vector.load %arg10[%c2_30, %c0_31, %c0_32] : memref<3x4x128xf32, #tpu.memory_space<vmem>>, vector<1x4x128xf32>
      %85 = vector.shape_cast %84 : vector<1x4x128xf32> to vector<4x128xf32>
      %86 = vector.shape_cast %83 : vector<4x128xf32> to vector<1x4x128xf32>
      tpu.vector_store %arg10[%c2_30, %c0_31, %c0_32], %86 {strides = array<i32>} : memref<3x4x128xf32, #tpu.memory_space<vmem>>, vector<1x4x128xf32>,
      %c2_33 = arith.constant 2 : index
      %c0_34 = arith.constant 0 : index
      %c0_35 = arith.constant 0 : index
      %87 = vector.load %arg11[%c2_33, %c0_34, %c0_35] : memref<3x4x128xf32, #tpu.memory_space<vmem>>, vector<1x4x128xf32>
      %88 = vector.shape_cast %87 : vector<1x4x128xf32> to vector<4x128xf32>
      %89 = arith.addf %88, %80 : vector<4x128xf32>
      %c2_36 = arith.constant 2 : index
      %c0_37 = arith.constant 0 : index
      %c0_38 = arith.constant 0 : index
      %90 = vector.load %arg11[%c2_36, %c0_37, %c0_38] : memref<3x4x128xf32, #tpu.memory_space<vmem>>, vector<1x4x128xf32>
      %91 = vector.shape_cast %90 : vector<1x4x128xf32> to vector<4x128xf32>
      %92 = vector.shape_cast %89 : vector<4x128xf32> to vector<1x4x128xf32>
      tpu.vector_store %arg11[%c2_36, %c0_37, %c0_38], %92 {strides = array<i32>} : memref<3x4x128xf32, #tpu.memory_space<vmem>>, vector<1x4x128xf32>,
    } else {
    }
    %c3_i32 = arith.constant 3 : i32
    %14 = arith.cmpi eq, %arg0, %c3_i32 : i32
    %15 = arith.extui %14 : i1 to i32
    %c0_i32_5 = arith.constant 0 : i32
    %16 = arith.cmpi ne, %15, %c0_i32_5 : i32
    scf.if %16 {
      %17 = arith.extui %4 : i1 to i32
      %c0_i32_6 = arith.constant 0 : i32
      %18 = arith.cmpi ne, %17, %c0_i32_6 : i32
      scf.if %18 {
        %c2_18 = arith.constant 2 : index
        %c0_19 = arith.constant 0 : index
        %c0_20 = arith.constant 0 : index
        %35 = vector.load %arg10[%c2_18, %c0_19, %c0_20] : memref<3x4x128xf32, #tpu.memory_space<vmem>>, vector<1x4x128xf32>
        %36 = vector.shape_cast %35 : vector<1x4x128xf32> to vector<4x128xf32>
        %cst = arith.constant dense<0.000000e+00> : vector<4xf32>
        %37 = vector.multi_reduction <add>, %36, %cst [1] : vector<4x128xf32> to vector<4xf32>
        %38 = vector.shape_cast %37 : vector<4xf32> to vector<4x1xf32>
        %cst_21 = arith.constant 9.765625E-4 : f32
        %39 = vector.broadcast %cst_21 : f32 to vector<4x1xf32>
        %40 = arith.mulf %38, %39 : vector<4x1xf32>
        %c2_22 = arith.constant 2 : index
        %c0_23 = arith.constant 0 : index
        %c0_24 = arith.constant 0 : index
        %41 = vector.load %arg11[%c2_22, %c0_23, %c0_24] : memref<3x4x128xf32, #tpu.memory_space<vmem>>, vector<1x4x128xf32>
        %42 = vector.shape_cast %41 : vector<1x4x128xf32> to vector<4x128xf32>
        %cst_25 = arith.constant dense<0.000000e+00> : vector<4xf32>
        %43 = vector.multi_reduction <add>, %42, %cst_25 [1] : vector<4x128xf32> to vector<4xf32>
        %44 = vector.shape_cast %43 : vector<4xf32> to vector<4x1xf32>
        %cst_26 = arith.constant 9.765625E-4 : f32
        %45 = vector.broadcast %cst_26 : f32 to vector<4x1xf32>
        %46 = arith.mulf %44, %45 : vector<4x1xf32>
        %47 = arith.mulf %40, %40 : vector<4x1xf32>
        %48 = arith.subf %46, %47 : vector<4x1xf32>
        %cst_27 = arith.constant 0.000000e+00 : f32
        %49 = vector.broadcast %cst_27 : f32 to vector<4x1xf32>
        %50 = arith.maximumf %48, %49 : vector<4x1xf32>
        %c2_28 = arith.constant 2 : index
        %c0_29 = arith.constant 0 : index
        %c0_30 = arith.constant 0 : index
        %51 = vector.load %arg6[%c2_28, %c0_29, %c0_30] : memref<3x4x1xf32, #tpu.memory_space<vmem>>, vector<1x4x1xf32>
        %52 = vector.shape_cast %51 : vector<1x4x1xf32> to vector<4x1xf32>
        %cst_31 = arith.constant 9.99999974E-6 : f32
        %53 = vector.broadcast %cst_31 : f32 to vector<4x1xf32>
        %54 = arith.addf %50, %53 : vector<4x1xf32>
        %55 = math.rsqrt %54 : vector<4x1xf32>
        %56 = arith.mulf %52, %55 : vector<4x1xf32>
        %c2_32 = arith.constant 2 : index
        %c0_33 = arith.constant 0 : index
        %c0_34 = arith.constant 0 : index
        %57 = vector.load %arg12[%c2_32, %c0_33, %c0_34] : memref<3x4x1xf32, #tpu.memory_space<vmem>>, vector<1x4x1xf32>
        %58 = vector.shape_cast %57 : vector<1x4x1xf32> to vector<4x1xf32>
        %59 = vector.shape_cast %56 : vector<4x1xf32> to vector<1x4x1xf32>
        tpu.vector_store %arg12[%c2_32, %c0_33, %c0_34], %59 {strides = array<i32>} : memref<3x4x1xf32, #tpu.memory_space<vmem>>, vector<1x4x1xf32>,
        %c2_35 = arith.constant 2 : index
        %c0_36 = arith.constant 0 : index
        %c0_37 = arith.constant 0 : index
        %60 = vector.load %arg7[%c2_35, %c0_36, %c0_37] : memref<3x4x1xf32, #tpu.memory_space<vmem>>, vector<1x4x1xf32>
        %61 = vector.shape_cast %60 : vector<1x4x1xf32> to vector<4x1xf32>
        %62 = arith.mulf %40, %56 : vector<4x1xf32>
        %63 = arith.subf %61, %62 : vector<4x1xf32>
        %c2_38 = arith.constant 2 : index
        %c0_39 = arith.constant 0 : index
        %c0_40 = arith.constant 0 : index
        %64 = vector.load %arg13[%c2_38, %c0_39, %c0_40] : memref<3x4x1xf32, #tpu.memory_space<vmem>>, vector<1x4x1xf32>
        %65 = vector.shape_cast %64 : vector<1x4x1xf32> to vector<4x1xf32>
        %66 = vector.shape_cast %63 : vector<4x1xf32> to vector<1x4x1xf32>
        tpu.vector_store %arg13[%c2_38, %c0_39, %c0_40], %66 {strides = array<i32>} : memref<3x4x1xf32, #tpu.memory_space<vmem>>, vector<1x4x1xf32>,
      } else {
      }
      %19 = arith.index_cast %1 : i32 to index
      %c0 = arith.constant 0 : index
      %c0_7 = arith.constant 0 : index
      %c0_8 = arith.constant 0 : index
      %20 = vector.load %arg9[%19, %c0, %c0_7, %c0_8] : memref<8x1x4x128xf32, #tpu.memory_space<vmem>>, vector<1x1x4x128xf32>
      %21 = vector.shape_cast %20 : vector<1x1x4x128xf32> to vector<1x4x128xf32>
      %c2 = arith.constant 2 : index
      %c0_9 = arith.constant 0 : index
      %c0_10 = arith.constant 0 : index
      %22 = vector.load %arg12[%c2, %c0_9, %c0_10] : memref<3x4x1xf32, #tpu.memory_space<vmem>>, vector<1x4x1xf32>
      %23 = vector.shape_cast %22 : vector<1x4x1xf32> to vector<4x1xf32>
      %24 = vector.shape_cast %23 : vector<4x1xf32> to vector<1x4x1xf32>
      %25 = vector.broadcast %24 : vector<1x4x1xf32> to vector<1x4x128xf32>
      %26 = arith.mulf %21, %25 : vector<1x4x128xf32>
      %c2_11 = arith.constant 2 : index
      %c0_12 = arith.constant 0 : index
      %c0_13 = arith.constant 0 : index
      %27 = vector.load %arg13[%c2_11, %c0_12, %c0_13] : memref<3x4x1xf32, #tpu.memory_space<vmem>>, vector<1x4x1xf32>
      %28 = vector.shape_cast %27 : vector<1x4x1xf32> to vector<4x1xf32>
      %29 = vector.shape_cast %28 : vector<4x1xf32> to vector<1x4x1xf32>
      %30 = vector.broadcast %29 : vector<1x4x1xf32> to vector<1x4x128xf32>
      %31 = arith.addf %26, %30 : vector<1x4x128xf32>
      %c0_14 = arith.constant 0 : index
      %c0_15 = arith.constant 0 : index
      %c0_16 = arith.constant 0 : index
      %c0_17 = arith.constant 0 : index
      %32 = vector.load %arg8[%c0_14, %c0_15, %c0_16, %c0_17] : memref<1x1x4x128xf32, #tpu.memory_space<vmem>>, vector<1x1x4x128xf32>
      %33 = vector.shape_cast %32 : vector<1x1x4x128xf32> to vector<1x4x128xf32>
      %34 = vector.shape_cast %31 : vector<1x4x128xf32> to vector<1x1x4x128xf32>
      tpu.vector_store %arg8[%c0_14, %c0_15, %c0_16, %c0_17], %34 {strides = array<i32>} : memref<1x1x4x128xf32, #tpu.memory_space<vmem>>, vector<1x1x4x128xf32>,
    } else {
    }
    return
  }
  func.func @transform_0(%arg0: i32, %arg1: i32, %arg2: i32) -> (i32, i32, i32, i32) {
    %c3_i32 = arith.constant 3 : i32
    %0 = arith.cmpi slt, %arg0, %c3_i32 : i32
    %c1_i32 = arith.constant 1 : i32
    %1 = arith.select %0, %arg1, %c1_i32 : i32
    %c2_i32 = arith.constant 2 : i32
    %2 = arith.minsi %arg0, %c2_i32 : i32
    %c3_i32_0 = arith.constant 3 : i32
    %3 = arith.select %0, %arg2, %c3_i32_0 : i32
    %c0_i32 = arith.constant 0 : i32
    %c0_i32_1 = arith.constant 0 : i32
    return %1, %2, %c0_i32, %3 : i32, i32, i32, i32
  }
  func.func @transform_1(%arg0: i32, %arg1: i32, %arg2: i32) -> (i32, i32, i32, i32) {
    %c0_i32 = arith.constant 0 : i32
    %0 = arith.cmpi eq, %arg0, %c0_i32 : i32
    %c1_i32 = arith.constant 1 : i32
    %1 = arith.select %0, %arg1, %c1_i32 : i32
    %c3_i32 = arith.constant 3 : i32
    %2 = arith.select %0, %arg2, %c3_i32 : i32
    %c3_i32_0 = arith.constant 3 : i32
    %c0_i32_1 = arith.constant 0 : i32
    %c0_i32_2 = arith.constant 0 : i32
    return %1, %c3_i32_0, %c0_i32_1, %2 : i32, i32, i32, i32
  }
  func.func @transform_2(%arg0: i32, %arg1: i32, %arg2: i32) -> (i32, i32, i32) {
    %c0_i32 = arith.constant 0 : i32
    %c0_i32_0 = arith.constant 0 : i32
    %c0_i32_1 = arith.constant 0 : i32
    %c0_i32_2 = arith.constant 0 : i32
    return %c0_i32, %c0_i32_0, %c0_i32_1 : i32, i32, i32
  }
  func.func @transform_3(%arg0: i32, %arg1: i32, %arg2: i32) -> (i32, i32, i32) {
    %c0_i32 = arith.constant 0 : i32
    %c0_i32_0 = arith.constant 0 : i32
    %c0_i32_1 = arith.constant 0 : i32
    %c0_i32_2 = arith.constant 0 : i32
    return %c0_i32, %c0_i32_0, %c0_i32_1 : i32, i32, i32
  }
  func.func @transform_4(%arg0: i32, %arg1: i32, %arg2: i32) -> (i32, i32, i32) {
    %c0_i32 = arith.constant 0 : i32
    %c0_i32_0 = arith.constant 0 : i32
    %c0_i32_1 = arith.constant 0 : i32
    %c0_i32_2 = arith.constant 0 : i32
    return %c0_i32, %c0_i32_0, %c0_i32_1 : i32, i32, i32
  }
  func.func @transform_5(%arg0: i32, %arg1: i32, %arg2: i32) -> (i32, i32, i32, i32) {
    %c0_i32 = arith.constant 0 : i32
    %0 = arith.cmpi eq, %arg0, %c0_i32 : i32
    %c1_i32 = arith.constant 1 : i32
    %1 = arith.subi %arg0, %c1_i32 : i32
    %c3_i32 = arith.constant 3 : i32
    %2 = arith.select %0, %c3_i32, %1 : i32
    %c0_i32_0 = arith.constant 0 : i32
    %c0_i32_1 = arith.constant 0 : i32
    return %arg1, %2, %c0_i32_0, %arg2 : i32, i32, i32, i32
  }
}

</mosaic_0001>

<bundles_post_ra>
// kernel: tpu_custom_call.1
= control target key start
LH: loop header
LB: loop body
LE: loop exit
PB: predicated region body
PF: predicated region fallthrough
CT: control target
= control target key end

     0   :  { %s1741_s0 = inlined_call_operand.hbm [shape: f32[2,4,4,512], index: 0, kind: input, shape index: {}]   ;;  %s1742_s1 = inlined_call_operand.hbm [shape: f32[2,4,4,512], index: 1, kind: input, shape index: {}]   ;;  %s1743_s2 = inlined_call_operand.vmem [shape: f32[3,4,4], index: 2, kind: input, shape index: {}]   ;;  %s1744_s3 = inlined_call_operand.vmem [shape: f32[3,4,1], index: 3, kind: input, shape index: {}]   ;;  %s1745_s4 = inlined_call_operand.vmem [shape: f32[3,4,1], index: 4, kind: input, shape index: {}]   ;;  %s1746_s5 = inlined_call_operand.hbm [shape: f32[2,4,4,512], index: 5, kind: output, shape index: {}]  }
   0x1   :  { %1764 = sst [smem:[#allocation30_spill]] %s1742_s1 }
   0x2   :  { %1765 = sst [smem:[#allocation31_spill]] %s1743_s2 }
   0x3   :  { %1766 = sst [smem:[#allocation32_spill]] %s1744_s3 }
   0x4   :  { %1767 = sst [smem:[#allocation33_spill]] %s1745_s4 }
   0x5   :  { %1768 = sst [smem:[#allocation34_spill]] %s1746_s5 }
   0x6   :  { %10 = vsyncpa [#allocation8], 0 }
   0x7   :  { %12 = vsyncpa [#allocation8 + $0x1], 0 }
   0x8   :  { %13 = vsyncpa [#allocation11], 0 }
   0x9   :  { %15 = vsyncpa [#allocation11 + $0x1], 0 }
   0xa   :  { %16 = vsyncpa [#allocation9], 0 }
   0xb   :  { %18 = vsyncpa [#allocation9 + $0x1], 0  ;;  %s1348_s18 = smov 0   ;;  %s1350_s19 = smov 0  }
   0xc   :  { %s1352_s20 = smov 0   ;;  %s1354_s21 = smov 0  }
   0xd   :  { %s1356_s22 = smov 0   ;;  %s1358_s23 = smov 0  }
   0xe   :  { %s1360_s24 = smov 0   ;;  %s1362_s25 = smov 0  }
   0xf   :  { %s1364_s26 = smov 0   ;;  %s1366_s27 = smov 0  }
  0x10   :  { %s1368_s28 = smov 0   ;;  %s1370_s29 = smov 0  }
  0x11   :  { %s1372_s30 = smov 0   ;;  %s1374_s6 = smov 0  }
  0x12   :  { %s1376_s7 = smov 0   ;;  %s1378_s8 = smov 0  }
  0x13 LB: > { %1769 = sst [smem:[#allocation16_spill]] %s1258_s22  ;;  %s1748_s9 = sadd.s32 4294967295, %s1302_s8   ;;  %s1302_s8 = sphi %s1378_s8, %s24_s8   ;;  %s1298_s7 = sphi %s1376_s7, %s1840_s7   ;;  %s1294_s6 = sphi %s1374_s6, %s1839_s6   ;;  %s1290_s30 = sphi %s1372_s30, %s1825_s30   ;;  %s1286_s29 = sphi %s1370_s29, %s1824_s29   ;;  %s1282_s28 = sphi %s1368_s28, %s1823_s28   ;;  %s1278_s27 = sphi %s1366_s27, %s1838_s27   ;;  %s1274_s26 = sphi %s1364_s26, %s1837_s26   ;;  %s1270_s25 = sphi %s1362_s25, %s1836_s25   ;;  %s1266_s24 = sphi %s1360_s24, %s1835_s24   ;;  %s1262_s23 = sphi %s1358_s23, %s1834_s23   ;;  %s1258_s22 = sphi %s1356_s22, %s1833_s22   ;;  %s1254_s21 = sphi %s1354_s21, %s1832_s21   ;;  %s1250_s20 = sphi %s1352_s20, %s1831_s20   ;;  %s1246_s19 = sphi %s1350_s19, %s1830_s19   ;;  %s1242_s18 = sphi %s1348_s18, %s1828_s18  }
  0x14   : > { %1770 = sst [smem:[#allocation17_spill]] %s1270_s25  ;;  %s36_s11 = sadd.s32 1, %s1290_s30 }
  0x15   : > { %1771 = sst [smem:[#allocation18_spill]] %s1278_s27  ;;  %s39_s12 = sadd.s32 1, %s1294_s6 }
  0x16   : > { %1772 = sst [smem:[#allocation19_spill]] %s1282_s28  ;;  %p37_p0 = scmp.ge.s32.totalorder %s36_s11, 4 }
  0x17   : > { %1773 = sst [smem:[#allocation20_spill]] %s1286_s29  ;;  %s43_s13 = sadd.s32 1, %s1298_s7 }
  0x18   : > { %1774 = sst [smem:[#allocation21_spill]] %s1290_s30  ;;  %p47_p1 = scmp.lt.s32.totalorder %s1298_s7, 3 }
  0x19   : > { %1775 = sst [smem:[#allocation22_spill]] %s1294_s6  ;;  %p49_p2 = scmp.lt.s32.totalorder %s1298_s7, 2 }
  0x1a   : > { %1776 = sst [smem:[#allocation23_spill]] %s1298_s7  ;;  %s1842_s11 = smov (%p37_p0, %s36_s11), 0 }
  0x1b   : > { %1777 = sst [smem:[#allocation24_spill]] %s1842_s11  ;;  %s1844_s12 = smov (!%p37_p0, %s39_s12), %s1294_s6 }
  0x1c   : > { %s1439_s14 = scalar_select %p47_p1, %s1294_s6, 1 }
  0x1d   : > { %p41_p3 = scmp.ge.s32.totalorder %s1844_s12, 2  ;;  %s64_s15 = sadd.s32 1, %s1274_s26 }
  0x1e   : > { %s1443_s16 = scalar_select %p49_p2, %s1298_s7, 2 }
  0x1f   : > { %s1846_s12 = smov (%p41_p3, %s1844_s12), 0  ;;  %s1848_s13 = smov (!%p41_p3, %s43_s13), %s1298_s7 }
  0x20   : > { %1778 = sst [smem:[#allocation25_spill]] %s1846_s12  ;;  %p45_p4 = scmp.ge.s32.totalorder %s1848_s13, 4 }
  0x21   : > { %s1449_s17 = scalar_select %p47_p1, %s1290_s30, 3 }
  0x22   : > { %p71_p5 = scmp.ne.s32.totalorder %s1274_s26, %s1270_s25  ;;  %p72_p6 = scmp.eq.s32.totalorder %s1302_s8, 0 }
  0x23   : > { %p77_p7 = scmp.ne.s32.totalorder %s1270_s25, %s1266_s24  ;;  %s1850_s13 = smov (%p45_p4, %s1848_s13), 0 }
  0x24   : > { %1779 = sst [smem:[#allocation26_spill]] %s1850_s13  ;;  %p1460_p8 = por %p72_p6, %p71_p5 }
  0x25   : > { %p1466_p9 = scmp.eq.s32.totalorder %s1748_s9, 0  ;;  %p52_p10 = scmp.lt.s32.totalorder %s1850_s13, 3 }
  0x26   : > { %p54_p11 = scmp.lt.s32.totalorder %s1850_s13, 2  ;;  %p87_p13 = scmp.eq.s32.totalorder %s1298_s7, 0 }
  0x27   : > { %p1474_p12 = por %p1466_p9, %p77_p7  ;;  %p90_p0 = scmp.eq.s32.totalorder %s1850_s13, 0 }
  0x28   : > { %s53_s9 = scalar_select %p52_p10, %s1846_s12, 1 }
  0x29   : > { %s1782_s24 = scalar_select %p1474_p12, 1, 0 }
  0x2a   : > { %s55_s4 = scalar_select %p54_p11, %s1850_s13, 2 }
  0x2b   : > { %1783 = sst [smem:[#allocation27_spill]] %s1782_s24  ;;  %s57_s2 = ssub.s32 %s1439_s14, %s53_s9 }
  0x2c   : > { %s56_s3 = scalar_select %p52_p10, %s1842_s11, 3 }
  0x2d   : > { %s58_s29 = ssub.s32 %s1443_s16, %s55_s4  ;;  %s98_s24 = sadd.s32 1, %s1262_s23 }
  0x2e   : > { %s59_s27 = sor.u32 %s58_s29, %s57_s2  ;;  %s60_s28 = ssub.s32 %s1449_s17, %s56_s3 }
  0x2f   : > { %s61_s25 = sor.u32 %s60_s28, %s59_s27  ;;  %p105_p2 = scmp.ne.s32.totalorder %s1262_s23, %s1258_s22 }
  0x30   : > { %p62_p1 = scmp.eq.s32.totalorder %s61_s25, 0  ;;  %p111_p3 = scmp.ne.s32.totalorder %s1258_s22, %s1254_s21 }
  0x31   : > { %s1490_s1 = scalar_select %p87_p13, %s1294_s6, 1 }
  0x32   : > { %s1493_s9 = scalar_select %p62_p1, %s1274_s26, %s64_s15  }
  0x33   : > { %s1498_s2 = scalar_select %p87_p13, %s1290_s30, 3 }
  0x34   : > { %1784 = sst [smem:[#allocation28_spill]] %s1493_s9  ;;  %p1514_p4 = por %p105_p2, %p72_p6 }
  0x35   : > { %s91_s3 = scalar_select %p90_p0, %s1846_s12, 1 }
  0x36   : > { %s92_s4 = scalar_select %p90_p0, %s1842_s11, 3 }
  0x37   : > { %s93_s25 = ssub.s32 %s1490_s1, %s91_s3  ;;  %p1520_p7 = por %p111_p3, %p1466_p9 }
  0x38   : > { %s94_s27 = ssub.s32 %s1498_s2, %s92_s4  ;;  %s854_s3 = sadd.s32 4294967295, %s1298_s7 }
  0x39   : > { %s95_s28 = sor.u32 %s94_s27, %s93_s25  ;;  %s855_s4 = sadd.s32 4294967295, %s1850_s13 }
  0x3a   : > { %p96_p5 = scmp.eq.s32.totalorder %s95_s28, 0  ;;  %s1852_s3 = smov (%p87_p13, %s854_s3), 3 }
  0x3b   : > { %s1786_s15 = scalar_select %p1520_p7, 1, 0 }
  0x3c   : > { %s1527_s21 = scalar_select %p96_p5, %s1262_s23, %s98_s24  }
  0x3d   : > { %1787 = sst [smem:[#allocation29_spill]] %s1786_s15  ;;  %s1854_s4 = smov (%p90_p0, %s855_s4), 3 }
  0x3e   : > { %s190_s25 = ssub.s32 %s1294_s6, %s1846_s12  ;;  %s193_s5 = ssub.s32 %s1290_s30, %s1842_s11 }
  0x3f   : > { %s191_s27 = ssub.s32 %s1852_s3, %s1854_s4  ;;  %s197_s28 = sadd.s32 1, %s1250_s20 }
  0x40   : > { %s192_s9 = sor.u32 %s191_s27, %s190_s25  ;;  %p207_p6 = scmp.ne.s32.totalorder %s1250_s20, %s1246_s19 }
  0x41   : > { %s194_s15 = sor.u32 %s193_s5, %s192_s9  ;;  %s1788_s22 = sadd.s32 4294967295, %s1302_s8  }
  0x42   : > { %p208_p9 = scmp.eq.s32.totalorder %s1788_s22, 31  ;;  %p195_p10 = scmp.eq.s32.totalorder %s194_s15, 0 }
  0x43   : > { %p213_p11 = scmp.ne.s32.totalorder %s1246_s19, %s1242_s18  ;;  %s1790_s13 = sadd.s32 4294967294, %s1302_s8  }
  0x44   : > { %p1544_p1 = por %p208_p9, %p207_p6  ;;  %p214_p13 = scmp.eq.s32.totalorder %s1790_s13, 31 }
  0x45   : > { %s1551_s12 = scalar_select %p195_p10, %s1250_s20, %s197_s28  }
  0x46   : > { %p1553_p0 = por %p214_p13, %p213_p11  ;;  %p908_p2 = scmp.lt.s32.totalorder %s1302_s8, 32 }
  0x47   : > { %s243_s9 = sand.u32 1, %s1274_s26   ;;  %s859_s15 = sshll.u32 %s1443_s16, 2 }
  0x48   : > { %s858_s22 = sshll.u32 %s243_s9, 2  ;;  %s256_s4 = sadd.s32 %s859_s15, %s1449_s17 }
  0x49   : > { %s860_s25 = sshll.u32 %s1439_s14, 4  ;;  %s247_s27 = scalar_lea.vmem [#allocation7], %s858_s22 }
  0x4a   : > { %s258_s5 = sadd.s32 %s860_s25, %s256_s4  ;;  %s264_s11 = sshll.u32 %s247_s27, 4  ;;  %s265_s11 = int_to_ptr.vmem [resolvable:$true] %s264_s11 }
  0x4b   : > { %s861_s7 = sshll.u32 %s258_s5, 2  ;;  %p898_p3 = pnand %p908_p2, %p1460_p8 }
  0x4c   : > { %s260_s6 = scalar_lea.hbm %s1741_s0, %s861_s7  ;;  %s271_s30 = sand.u32 1, %s1262_s23  }
  0x4d   : > { %s262_s16 = sshll.u32 %s260_s6, 4  ;;  %s244_s14 = scalar_lea.sflag [#allocation8], %s243_s9  ;;  %s263_s16 = int_to_ptr.hbm [resolvable:$true] %s262_s16 }
  0x4e   : > { %900 = dma.hbm_to_vmem [thread:$0]  (!%p898_p3), %s263_s16, 64, %s265_s11, %s244_s14  }
  0x4f   : > { %s862_s17 = sshll.u32 %s271_s30, 2  ;;  %s863_s22 = sshll.u32 %s1490_s1, 4 }
  0x50   : > { %s755_s15 = sadd.s32 %s863_s22, %s1498_s2  ;;  %s275_s4 = scalar_lea.vmem [#allocation10], %s862_s17 }
  0x51   : > { %s289_s25 = sshll.u32 %s275_s4, 4  ;;  %s864_s5 = sshll.u32 %s755_s15, 2  ;;  %s290_s25 = int_to_ptr.vmem [resolvable:$true] %s289_s25 }
  0x52   : > { %s1792_s7 = sld [smem:[#allocation30_spill]]  ;;  %p901_p8 = pnand %p908_p2, %p1514_p4 }
  0x53   : > { %p865_p5 = scmp.ge.s32.totalorder %s1302_s8, 1  ;;  %p294_p6 = scmp.lt.s32.totalorder %s1302_s8, 33 }
  0x54   : > { %s272_s11 = scalar_lea.sflag [#allocation11], %s271_s30 }
  0x55   : > { %p295_p9 = pnand %p865_p5, %p294_p6 }
  0x56   : > { %s1793_s1 = sld [smem:[#allocation17_spill]] (!%p295_p9) }
  0x57   : > { %298 = sbr.rel (%p295_p9) target bundleno = 1260 (0x4ec), region = 40 }
  0x58   : > { %s757_s10 = scalar_lea.hbm %s1792_s7, %s864_s5 }
  0x59   : > { %s758_s6 = scalar_lea.hbm %s757_s10, 48 }
  0x5a   : > { %s287_s28 = sshll.u32 %s758_s6, 4  ;;  %s288_s28 = int_to_ptr.hbm [resolvable:$true] %s287_s28 }
  0x5b   : > { %903 = dma.hbm_to_vmem [thread:$0]  (!%p901_p8), %s288_s28, 64, %s290_s25, %s272_s11  }
  0x5c   : > { %s300_s9 = sand.u32 1, %s1793_s1  }
  0x5d   : > { %s866_s16 = sshll.u32 %s300_s9, 2  ;;  %s301_s14 = scalar_lea.sflag [#allocation8], %s300_s9 }
  0x5e   : > { %s1582_s17 = scalar_lea.vmem [#allocation7], %s866_s16 }
  0x5f   : > { %1229 = dma.done.wait (%p1474_p12), %s301_s14, 64  }
  0x60   : > { %1231 = vsyncadd (%p1474_p12), %s301_s14, 4294967232  ;;  %s1795_s29 = sld [smem:[#allocation16_spill]] }
  0x66   : > { %s310_s15 = sand.u32 1, %s1795_s29  }
  0x67   : > { %s1589_s4 = sshll.u32 %s310_s15, 2  ;;  %s311_s30 = scalar_lea.sflag [#allocation11], %s310_s15 }
  0x68   : > { %s314_s25 = scalar_lea.vmem [#allocation10], %s1589_s4 }
  0x69   : > { %1233 = dma.done.wait (%p1520_p7), %s311_s30, 64  }
  0x6a   : > { %1235 = vsyncadd (%p1520_p7), %s311_s30, 4294967232  ;;  %s1797_s5 = sld [smem:[#allocation19_spill]]  ;;  %s344_s13 = sand.u32 1, %s1246_s19  }
  0x6b   : > { %s1798_s27 = sld [smem:[#allocation18_spill]]  ;;  %s868_s10 = sshll.u32 %s344_s13, 2 }
  0x6c   : > { %s1609_s11 = scalar_lea.vmem [#allocation12], %s868_s10  ;;  %s1800_s1 = sld [smem:[#allocation20_spill]] }
  0x70   : > { %s869_s7 = sshll.u32 %s1797_s5, 2  ;;  %p360_p12 = scmp.eq.s32.totalorder %s1797_s5, 0 }
  0x71   : > { %s1601_s6 = sadd.s32 %s1798_s27, %s869_s7  ;;  %p361_p4 = scmp.eq.s32.totalorder %s1798_s27, 0 }
  0x72   : > { %p870_p7 = scmp.ne.s32.totalorder %s1800_s1, 0 }
  0x73   : > { %p1605_p10 = pnand %p361_p4, %p360_p12 }
  0x74   : > { %367 = sbr.rel (%p870_p7) target bundleno = 279 (0x117), region = 52 }
  0x79   : > { %369 = sbr.rel (%p1605_p10) target bundleno = 133 (0x85), region = 56 }
  0x7e   : > { %v1304_v0 = vmov 0.0  }
  0x7f   : > { %370 = vst [vmem:[#allocation3] sm:$0xf] %v1304_v0 }
  0x80   : > { %371 = vst [vmem:[#allocation3 + $0x4] sm:$0xf] %v1304_v0 }
  0x81   : > { %372 = vst [vmem:[#allocation3 + $0x8] sm:$0xf] %v1304_v0 }
  0x82   : > { %373 = vst [vmem:[#allocation4] sm:$0xf] %v1304_v0 }
  0x83   : > { %374 = vst [vmem:[#allocation4 + $0x4] sm:$0xf] %v1304_v0 }
  0x84   : > { %375 = vst [vmem:[#allocation4 + $0x8] sm:$0xf] %v1304_v0 }
  0x85 PF: > { %s1801_s16 = sld [smem:[#allocation31_spill]]  ;;  %v1305_v2 = vmov 0   ;;  %v1306_v3 = vmov 2   ;;  %v1307_v4 = vmov 1   ;;  %v1308_v5 = vmov 3   ;;  %s871_s14 = sshll.u32 %s1601_s6, 2 }
  0x86   : > { %1052 = vset.pattern.permute.xlu0 %v1305_v2  ;;  %1054 = vset.pattern.permute.xlu1 %v1306_v3  ;;  %v376_v6 = vld [vmem:[%s314_s25] sm:$0xf]  ;;  %v379_v9 = vld [vmem:[%s1582_s17] sm:$0xf]  ;;  %v413_v23 = vld [vmem:[#allocation3] sm:$0xf] }
  0x87   : > { %377 = vst [vmem:[%s1609_s11] sm:$0xf] %v376_v6  ;;  %v385_v10 = vperm.slane %v379_v9, 0  ;;  %v391_v11 = vperm.slane %v379_v9, 1  ;;  %v398_v12 = vperm.slane %v379_v9, 2  ;;  %v405_v13 = vperm.slane %v379_v9, 3  ;;  %s410_s29 = scalar_lea.vmem [#allocation2], %s871_s14 }
  0x89   : > { %v416_v25 = vld [vmem:[#allocation4] sm:$0xf] }
  0x8b   : > { %v378_v1 = vld [vmem:[%s1801_s16] sm:$0xf] }
  0x8c   : > { %382 = vperm.xlu0 %1052, %v378_v1   ;;  %395 = vperm.xlu1 %1054, %v378_v1  }
  0x94   : > { %1053 = vset.pattern.permute.xlu0 %v1307_v4  ;;  %1055 = vset.pattern.permute.xlu1 %v1308_v5 }
  0x95   : > { %388 = vperm.xlu0 %1053, %v378_v1   ;;  %402 = vperm.xlu1 %1055, %v378_v1  }
  0x9d   : > { %1056 = vset.pattern.permute.xlu0 %v1308_v5 }
  0xfe   : > { %v383_v7 = vpop.permute.xlu0 %382  ;;  %v396_v8 = vpop.permute.xlu1 %395 }
  0xff   : > { %v386_v16 = vmul.f32 %v385_v10, %v383_v7  ;;  %v399_v18 = vmul.f32 %v398_v12, %v396_v8 }
 0x107   : > { %v389_v14 = vpop.permute.xlu0 %388  ;;  %v403_v15 = vpop.permute.xlu1 %402 }
 0x108   : > { %v392_v17 = vmul.f32 %v391_v11, %v389_v14  ;;  %v406_v20 = vmul.f32 %v405_v13, %v403_v15 }
 0x10a   : > { %v393_v19 = vadd.f32 %v392_v17, %v386_v16 }
 0x10c   : > { %v400_v21 = vadd.f32 %v399_v18, %v393_v19 }
 0x10e   : > { %v407_v22 = vadd.f32 %v406_v20, %v400_v21 }
 0x110   : > { %v408_v24 = vmax.f32 %v407_v22, 0.0 }
 0x112   : > { %411 = vst [vmem:[%s410_s29] sm:$0xf] %v408_v24  ;;  %v412_v26 = vmul.f32 %v408_v24, %v408_v24  ;;  %v414_v27 = vadd.f32 %v413_v23, %v408_v24 }
 0x114   : > { %415 = vst [vmem:[#allocation3] sm:$0xf] %v414_v27  ;;  %v417_v28 = vadd.f32 %v416_v25, %v412_v26 }
 0x116   : > { %418 = vst [vmem:[#allocation4] sm:$0xf] %v417_v28 }
 0x117 PF: > { %s1802_s22 = sld [smem:[#allocation20_spill]] }
 0x11d   : > { %p872_p11 = scmp.ne.s32.totalorder %s1802_s22, 1 }
 0x11f   : > { %422 = sbr.rel (%p872_p11) target bundleno = 603 (0x25b), region = 60 }
 0x124   : > { %424 = sbr.rel (%p1605_p10) target bundleno = 456 (0x1c8), region = 64  ;;  %s1803_s30 = sld [smem:[#allocation32_spill]] (!%p1605_p10) }
 0x125   : > { %s1804_s27 = sld [smem:[#allocation33_spill]] (!%p1605_p10) }
 0x129   : > { %v425_v29 = vld [vmem:[#allocation3] sm:$0xf]  ;;  %vm426_vm0 = vcmask 1043456   ;;  %v431_v31 = vld [vmem:[#allocation4] sm:$0xf]  ;;  %vm452_vm4 = vcmask 3072  }
 0x12a   : > { %v427_v30 = vsel %vm426_vm0, %v425_v29, 0.0  ;;  %v432_v32 = vsel %vm426_vm0, %v431_v31, 0.0  ;;  %v439_v46 = vld [vmem:[%s1803_s30] sm:$0xf] }
 0x12b   : > { %428 = vadd.xlane.f32.xlu0 %v427_v30  ;;  %v454_v50 = vld [vmem:[%s1804_s27] sm:$0xf] }
 0x133   : > { %433 = vadd.xlane.f32.xlu0 %v432_v32 }
 0x19e   : > { %v429_v33 = vpop.xlane.xlu0 %428 }
 0x19f   : > { %v430_v34 = vmul.f32 0.0009765625, %v429_v33 }
 0x1a1   : > { %v436_v36 = vmul.f32 %v430_v34, %v430_v34 }
 0x1a6   : > { %v434_v35 = vpop.xlane.xlu0 %433 }
 0x1a7   : > { %v435_v37 = vmul.f32 0.0009765625, %v434_v35 }
 0x1a9   : > { %v437_v38 = vsub.f32 %v435_v37, %v436_v36 }
 0x1ab   : > { %v438_v39 = vmax.f32 %v437_v38, 0.0 }
 0x1ad   : > { %v440_v40 = vadd.f32 1e-05, %v438_v39 }
 0x1af   : > { %1057 = vrsqrt.f32 %v440_v40  ;;  %vm447_vm2 = vweird.f32 %v440_v40 }
 0x1b5   : > { %v1058_v41 = vpop.eup %1057 }
 0x1b6   : > { %v442_v42 = vmul.f32 %v1058_v41, %v440_v40  ;;  %vm448_vm1 = vweird.f32 %v1058_v41 }
 0x1b7   : > { %vm449_vm3 = vmor %vm447_vm2, %vm448_vm1 }
 0x1b8   : > { %v443_v43 = vmul.f32 %v1058_v41, %v442_v42 }
 0x1ba   : > { %v444_v44 = vmul.f32 0.5, %v443_v43 }
 0x1bc   : > { %v445_v45 = vsub.f32 1.5, %v444_v44 }
 0x1be   : > { %v446_v47 = vmul.f32 %v1058_v41, %v445_v45 }
 0x1c0   : > { %v450_v48 = vsel %vm449_vm3, %v1058_v41, %v446_v47 }
 0x1c1   : > { %v451_v49 = vmul.f32 %v450_v48, %v439_v46 }
 0x1c3   : > { %453 = vst.msk [vmem:[#allocation5] sm:$0xf] %vm452_vm4, %v451_v49  ;;  %v455_v51 = vmul.f32 %v451_v49, %v430_v34 }
 0x1c5   : > { %v456_v52 = vsub.f32 %v454_v50, %v455_v51 }
 0x1c7   : > { %457 = vst.msk [vmem:[#allocation6] sm:$0xf] %vm452_vm4, %v456_v52 }
 0x1c8 PF: > { %s1805_s1 = sld [smem:[#allocation31_spill]]  ;;  %v1309_v55 = vmov 0   ;;  %v1310_v56 = vmov 2   ;;  %v1311_v58 = vmov 1   ;;  %v1312_v59 = vmov 3   ;;  %s873_s2 = sshll.u32 %s1601_s6, 2 }
 0x1c9   : > { %1059 = vset.pattern.permute.xlu0 %v1309_v55  ;;  %1060 = vset.pattern.permute.xlu1 %v1309_v55  ;;  %s459_s9 = scalar_lea.vmem [#allocation2], %s873_s2  ;;  %v478_v1 = vld [vmem:[%s1582_s17] sm:$0xf]  ;;  %v512_v18 = vld [vmem:[#allocation3 + $0x4] sm:$0xf] }
 0x1ca   : > { %v461_v53 = vld [vmem:[#allocation5] sm:$0xf]  ;;  %1062 = vset.pattern.permute.xlu2 %v1310_v56  ;;  %v460_v62 = vld [vmem:[%s459_s9] sm:$0xf]  ;;  %v516_v20 = vld [vmem:[#allocation4 + $0x4] sm:$0xf] }
 0x1cb   : > { %464 = vperm.xlu0 %1059, %v461_v53  }
 0x1ce   : > { %v874_v54 = vld [vmem:[%s1805_s1 + $0x4] sm:$0xf] }
 0x1cf   : > { %482 = vperm.xlu1 %1060, %v874_v54   ;;  %495 = vperm.xlu2 %1062, %v874_v54   ;;  %v468_v57 = vld [vmem:[#allocation6] sm:$0xf] }
 0x1d3   : > { %471 = vperm.xlu0 %1059, %v468_v57  }
 0x1d7   : > { %1061 = vset.pattern.permute.xlu1 %v1311_v58  ;;  %1063 = vset.pattern.permute.xlu2 %v1312_v59 }
 0x1d8   : > { %488 = vperm.xlu1 %1061, %v874_v54   ;;  %502 = vperm.xlu2 %1063, %v874_v54  }
 0x1db   : > { %1064 = vset.pattern.permute.xlu0 %v1312_v59 }
 0x229   : > { %v496_v63 = vpop.permute.xlu2 %495 }
 0x232   : > { %v503_v12 = vpop.permute.xlu2 %502 }
 0x23d   : > { %v465_v60 = vpop.permute.xlu0 %464 }
 0x23e   : > { %v467_v0 = vmul.f32 %v465_v60, %v460_v62 }
 0x241   : > { %v483_v61 = vpop.permute.xlu1 %482 }
 0x245   : > { %v472_v2 = vpop.permute.xlu0 %471 }
 0x246   : > { %v474_v3 = vadd.f32 %v472_v2, %v467_v0 }
 0x248   : > { %475 = vst [vmem:[%s1609_s11] sm:$0xf] %v474_v3  ;;  %v479_v4 = vadd.f32 %v478_v1, %v474_v3 }
 0x24a   : > { %v489_v5 = vpop.permute.xlu1 %488  ;;  %v485_v6 = vperm.slane %v479_v4, 0  ;;  %v491_v7 = vperm.slane %v479_v4, 1  ;;  %v498_v8 = vperm.slane %v479_v4, 2  ;;  %v505_v9 = vperm.slane %v479_v4, 3 }
 0x24c   : > { %v486_v10 = vmul.f32 %v485_v6, %v483_v61  ;;  %v492_v11 = vmul.f32 %v491_v7, %v489_v5  ;;  %v499_v14 = vmul.f32 %v498_v8, %v496_v63  ;;  %v506_v15 = vmul.f32 %v505_v9, %v503_v12 }
 0x24e   : > { %v493_v13 = vadd.f32 %v492_v11, %v486_v10 }
 0x250   : > { %v500_v16 = vadd.f32 %v499_v14, %v493_v13 }
 0x252   : > { %v507_v17 = vadd.f32 %v506_v15, %v500_v16 }
 0x254   : > { %v508_v19 = vmax.f32 %v507_v17, 0.0 }
 0x256   : > { %509 = vst [vmem:[%s459_s9] sm:$0xf] %v508_v19  ;;  %v510_v21 = vmul.f32 %v508_v19, %v508_v19  ;;  %v513_v22 = vadd.f32 %v512_v18, %v508_v19 }
 0x258   : > { %514 = vst [vmem:[#allocation3 + $0x4] sm:$0xf] %v513_v22  ;;  %v517_v23 = vadd.f32 %v516_v20, %v510_v21 }
 0x25a   : > { %518 = vst [vmem:[#allocation4 + $0x4] sm:$0xf] %v517_v23 }
 0x25b PF: > { %s1806_s16 = sld [smem:[#allocation20_spill]] }
 0x261   : > { %p875_p13 = scmp.ne.s32.totalorder %s1806_s16, 2 }
 0x263   : > { %522 = sbr.rel (%p875_p13) target bundleno = 927 (0x39f), region = 68 }
 0x268   : > { %524 = sbr.rel (%p1605_p10) target bundleno = 780 (0x30c), region = 72  ;;  %s1807_s22 = sld [smem:[#allocation32_spill]] (!%p1605_p10) }
 0x269   : > { %s1808_s30 = sld [smem:[#allocation33_spill]] (!%p1605_p10) }
 0x26d   : > { %v526_v24 = vld [vmem:[#allocation3 + $0x4] sm:$0xf]  ;;  %vm527_vm5 = vcmask 1043456   ;;  %v533_v26 = vld [vmem:[#allocation4 + $0x4] sm:$0xf]  ;;  %vm556_vm9 = vcmask 3072  }
 0x26e   : > { %v528_v25 = vsel %vm527_vm5, %v526_v24, 0.0  ;;  %v534_v27 = vsel %vm527_vm5, %v533_v26, 0.0  ;;  %v876_v41 = vld [vmem:[%s1807_s22 + $0x4] sm:$0xf] }
 0x26f   : > { %529 = vadd.xlane.f32.xlu0 %v528_v25  ;;  %v877_v45 = vld [vmem:[%s1808_s30 + $0x4] sm:$0xf] }
 0x277   : > { %535 = vadd.xlane.f32.xlu0 %v534_v27 }
 0x2e2   : > { %v530_v28 = vpop.xlane.xlu0 %529 }
 0x2e3   : > { %v531_v29 = vmul.f32 0.0009765625, %v530_v28 }
 0x2e5   : > { %v538_v31 = vmul.f32 %v531_v29, %v531_v29 }
 0x2ea   : > { %v536_v30 = vpop.xlane.xlu0 %535 }
 0x2eb   : > { %v537_v32 = vmul.f32 0.0009765625, %v536_v30 }
 0x2ed   : > { %v539_v33 = vsub.f32 %v537_v32, %v538_v31 }
 0x2ef   : > { %v540_v34 = vmax.f32 %v539_v33, 0.0 }
 0x2f1   : > { %v543_v35 = vadd.f32 1e-05, %v540_v34 }
 0x2f3   : > { %1065 = vrsqrt.f32 %v543_v35  ;;  %vm550_vm7 = vweird.f32 %v543_v35 }
 0x2f9   : > { %v1066_v36 = vpop.eup %1065 }
 0x2fa   : > { %v545_v37 = vmul.f32 %v1066_v36, %v543_v35  ;;  %vm551_vm6 = vweird.f32 %v1066_v36 }
 0x2fb   : > { %vm552_vm8 = vmor %vm550_vm7, %vm551_vm6 }
 0x2fc   : > { %v546_v38 = vmul.f32 %v1066_v36, %v545_v37 }
 0x2fe   : > { %v547_v39 = vmul.f32 0.5, %v546_v38 }
 0x300   : > { %v548_v40 = vsub.f32 1.5, %v547_v39 }
 0x302   : > { %v549_v42 = vmul.f32 %v1066_v36, %v548_v40 }
 0x304   : > { %v553_v43 = vsel %vm552_vm8, %v1066_v36, %v549_v42 }
 0x305   : > { %v554_v44 = vmul.f32 %v876_v41, %v553_v43 }
 0x307   : > { %557 = vst.msk [vmem:[#allocation5 + $0x4] sm:$0xf] %vm556_vm9, %v554_v44  ;;  %v560_v46 = vmul.f32 %v554_v44, %v531_v29 }
 0x309   : > { %v561_v47 = vsub.f32 %v877_v45, %v560_v46 }
 0x30b   : > { %563 = vst.msk [vmem:[#allocation6 + $0x4] sm:$0xf] %vm556_vm9, %v561_v47 }
 0x30c PF: > { %s1809_s27 = sld [smem:[#allocation31_spill]]  ;;  %v1313_v50 = vmov 0   ;;  %v1314_v51 = vmov 2   ;;  %v1315_v53 = vmov 1   ;;  %v1316_v54 = vmov 3   ;;  %s878_s7 = sshll.u32 %s1601_s6, 2 }
 0x30d   : > { %1067 = vset.pattern.permute.xlu0 %v1313_v50  ;;  %1068 = vset.pattern.permute.xlu1 %v1313_v50  ;;  %s565_s10 = scalar_lea.vmem [#allocation2], %s878_s7  ;;  %v586_v60 = vld [vmem:[%s1582_s17] sm:$0xf]  ;;  %v620_v13 = vld [vmem:[#allocation3 + $0x8] sm:$0xf] }
 0x30e   : > { %v568_v48 = vld [vmem:[#allocation5 + $0x4] sm:$0xf]  ;;  %1070 = vset.pattern.permute.xlu2 %v1314_v51  ;;  %v566_v57 = vld [vmem:[%s565_s10] sm:$0xf]  ;;  %v624_v15 = vld [vmem:[#allocation4 + $0x8] sm:$0xf] }
 0x30f   : > { %571 = vperm.xlu0 %1067, %v568_v48  }
 0x312   : > { %v879_v49 = vld [vmem:[%s1809_s27 + $0x8] sm:$0xf] }
 0x313   : > { %590 = vperm.xlu1 %1068, %v879_v49   ;;  %603 = vperm.xlu2 %1070, %v879_v49   ;;  %v576_v52 = vld [vmem:[#allocation6 + $0x4] sm:$0xf] }
 0x317   : > { %579 = vperm.xlu0 %1067, %v576_v52  }
 0x31b   : > { %1069 = vset.pattern.permute.xlu1 %v1315_v53  ;;  %1071 = vset.pattern.permute.xlu2 %v1316_v54 }
 0x31c   : > { %596 = vperm.xlu1 %1069, %v879_v49   ;;  %610 = vperm.xlu2 %1071, %v879_v49  }
 0x31f   : > { %1072 = vset.pattern.permute.xlu0 %v1316_v54 }
 0x36d   : > { %v604_v58 = vpop.permute.xlu2 %603 }
 0x376   : > { %v611_v7 = vpop.permute.xlu2 %610 }
 0x381   : > { %v572_v55 = vpop.permute.xlu0 %571 }
 0x382   : > { %v574_v59 = vmul.f32 %v572_v55, %v566_v57 }
 0x385   : > { %v591_v56 = vpop.permute.xlu1 %590 }
 0x389   : > { %v580_v61 = vpop.permute.xlu0 %579 }
 0x38a   : > { %v582_v62 = vadd.f32 %v580_v61, %v574_v59 }
 0x38c   : > { %583 = vst [vmem:[%s1609_s11] sm:$0xf] %v582_v62  ;;  %v587_v63 = vadd.f32 %v586_v60, %v582_v62 }
 0x38e   : > { %v597_v0 = vpop.permute.xlu1 %596  ;;  %v593_v1 = vperm.slane %v587_v63, 0  ;;  %v599_v2 = vperm.slane %v587_v63, 1  ;;  %v606_v3 = vperm.slane %v587_v63, 2  ;;  %v613_v4 = vperm.slane %v587_v63, 3 }
 0x390   : > { %v594_v5 = vmul.f32 %v593_v1, %v591_v56  ;;  %v600_v6 = vmul.f32 %v599_v2, %v597_v0  ;;  %v607_v9 = vmul.f32 %v606_v3, %v604_v58  ;;  %v614_v10 = vmul.f32 %v613_v4, %v611_v7 }
 0x392   : > { %v601_v8 = vadd.f32 %v600_v6, %v594_v5 }
 0x394   : > { %v608_v11 = vadd.f32 %v607_v9, %v601_v8 }
 0x396   : > { %v615_v12 = vadd.f32 %v614_v10, %v608_v11 }
 0x398   : > { %v616_v14 = vmax.f32 %v615_v12, 0.0 }
 0x39a   : > { %617 = vst [vmem:[%s565_s10] sm:$0xf] %v616_v14  ;;  %v618_v16 = vmul.f32 %v616_v14, %v616_v14  ;;  %v621_v17 = vadd.f32 %v620_v13, %v616_v14 }
 0x39c   : > { %622 = vst [vmem:[#allocation3 + $0x8] sm:$0xf] %v621_v17  ;;  %v625_v18 = vadd.f32 %v624_v15, %v618_v16 }
 0x39e   : > { %626 = vst [vmem:[#allocation4 + $0x8] sm:$0xf] %v625_v18 }
 0x39f PF: > { %s1810_s17 = sld [smem:[#allocation20_spill]] }
 0x3a5   : > { %p880_p2 = scmp.ne.s32.totalorder %s1810_s17, 3 }
 0x3a7   : > { %630 = sbr.rel (%p880_p2) target bundleno = 1233 (0x4d1), region = 76 }
 0x3ac   : > { %632 = sbr.rel (%p1605_p10) target bundleno = 1104 (0x450), region = 80  ;;  %s1811_s2 = sld [smem:[#allocation32_spill]] (!%p1605_p10) }
 0x3ad   : > { %s1812_s14 = sld [smem:[#allocation33_spill]] (!%p1605_p10) }
 0x3b1   : > { %v634_v19 = vld [vmem:[#allocation3 + $0x8] sm:$0xf]  ;;  %vm635_vm10 = vcmask 1043456   ;;  %v641_v21 = vld [vmem:[#allocation4 + $0x8] sm:$0xf]  ;;  %vm664_vm14 = vcmask 3072  }
 0x3b2   : > { %v636_v20 = vsel %vm635_vm10, %v634_v19, 0.0  ;;  %v642_v22 = vsel %vm635_vm10, %v641_v21, 0.0  ;;  %v881_v36 = vld [vmem:[%s1811_s2 + $0x8] sm:$0xf] }
 0x3b3   : > { %637 = vadd.xlane.f32.xlu0 %v636_v20  ;;  %v882_v40 = vld [vmem:[%s1812_s14 + $0x8] sm:$0xf] }
 0x3bb   : > { %643 = vadd.xlane.f32.xlu0 %v642_v22 }
 0x426   : > { %v638_v23 = vpop.xlane.xlu0 %637 }
 0x427   : > { %v639_v24 = vmul.f32 0.0009765625, %v638_v23 }
 0x429   : > { %v646_v26 = vmul.f32 %v639_v24, %v639_v24 }
 0x42e   : > { %v644_v25 = vpop.xlane.xlu0 %643 }
 0x42f   : > { %v645_v27 = vmul.f32 0.0009765625, %v644_v25 }
 0x431   : > { %v647_v28 = vsub.f32 %v645_v27, %v646_v26 }
 0x433   : > { %v648_v29 = vmax.f32 %v647_v28, 0.0 }
 0x435   : > { %v651_v30 = vadd.f32 1e-05, %v648_v29 }
 0x437   : > { %1073 = vrsqrt.f32 %v651_v30  ;;  %vm658_vm12 = vweird.f32 %v651_v30 }
 0x43d   : > { %v1074_v31 = vpop.eup %1073 }
 0x43e   : > { %v653_v32 = vmul.f32 %v1074_v31, %v651_v30  ;;  %vm659_vm11 = vweird.f32 %v1074_v31 }
 0x43f   : > { %vm660_vm13 = vmor %vm658_vm12, %vm659_vm11 }
 0x440   : > { %v654_v33 = vmul.f32 %v1074_v31, %v653_v32 }
 0x442   : > { %v655_v34 = vmul.f32 0.5, %v654_v33 }
 0x444   : > { %v656_v35 = vsub.f32 1.5, %v655_v34 }
 0x446   : > { %v657_v37 = vmul.f32 %v1074_v31, %v656_v35 }
 0x448   : > { %v661_v38 = vsel %vm660_vm13, %v1074_v31, %v657_v37 }
 0x449   : > { %v662_v39 = vmul.f32 %v881_v36, %v661_v38 }
 0x44b   : > { %665 = vst.msk [vmem:[#allocation5 + $0x8] sm:$0xf] %vm664_vm14, %v662_v39  ;;  %v668_v41 = vmul.f32 %v662_v39, %v639_v24 }
 0x44d   : > { %v669_v42 = vsub.f32 %v882_v40, %v668_v41 }
 0x44f   : > { %671 = vst.msk [vmem:[#allocation6 + $0x8] sm:$0xf] %vm664_vm14, %v669_v42 }
 0x450 PF: > { %v1317_v44 = vmov 0   ;;  %s883_s29 = sshll.u32 %s1601_s6, 2 }
 0x451   : > { %1075 = vset.pattern.permute.xlu0 %v1317_v44  ;;  %s673_s22 = scalar_lea.vmem [#allocation2], %s883_s29 }
 0x452   : > { %v676_v43 = vld [vmem:[#allocation5 + $0x8] sm:$0xf] }
 0x453   : > { %679 = vperm.xlu0 %1075, %v676_v43   ;;  %v674_v47 = vld [vmem:[%s673_s22] sm:$0xf] }
 0x456   : > { %v684_v45 = vld [vmem:[#allocation6 + $0x8] sm:$0xf] }
 0x45b   : > { %687 = vperm.xlu0 %1075, %v684_v45  }
 0x4c5   : > { %v680_v46 = vpop.permute.xlu0 %679 }
 0x4c6   : > { %v682_v48 = vmul.f32 %v680_v46, %v674_v47 }
 0x4cd   : > { %v688_v49 = vpop.permute.xlu0 %687 }
 0x4ce   : > { %v690_v50 = vadd.f32 %v688_v49, %v682_v48 }
 0x4d0   : > { %691 = vst [vmem:[%s1609_s11] sm:$0xf] %v690_v50 }
 0x4d1 PF: > { %s1813_s15 = sld [smem:[#allocation20_spill]]  ;;  %s712_s7 = sshll.u32 %s1609_s11, 4  ;;  %s713_s7 = int_to_ptr.vmem [resolvable:$true] %s712_s7 }
 0x4d2   : > { %s1814_s4 = sld [smem:[#allocation19_spill]]  ;;  %s693_s14 = scalar_lea.sflag [#allocation9], %s344_s13 }
 0x4d3   : > { %s1815_s30 = sld [smem:[#allocation18_spill]] }
 0x4d4   : > { %s1816_s2 = sld [smem:[#allocation34_spill]] }
 0x4d7   : > { %p700_p3 = scmp.eq.s32.totalorder %s1813_s15, 0  ;;  %s885_s25 = sadd.s32 4294967295, %s1813_s15 }
 0x4d8   : > { %s887_s5 = sshll.u32 %s1814_s4, 4 }
 0x4d9   : > { %s1856_s25 = smov (%p700_p3, %s885_s25), 3 }
 0x4da   : > { %s886_s6 = sshll.u32 %s1856_s25, 2  ;;  %s1156_s4 = scalar_lea.hbm %s1816_s2, 128 }
 0x4db   : > { %s706_s27 = sadd.s32 %s1815_s30, %s886_s6 }
 0x4dc   : > { %s708_s10 = sadd.s32 %s887_s5, %s706_s27 }
 0x4dd   : > { %s888_s17 = sshll.u32 %s708_s10, 2 }
 0x4de   : > { %s710_s9 = scalar_lea.hbm %s1816_s2, %s888_s17 }
 0x4df   : > { %s714_s16 = sshll.u32 %s710_s9, 4  ;;  %s715_s16 = int_to_ptr.hbm [resolvable:$true] %s714_s16 }
 0x4e0   : > { %s1150_s29 = sshra.s32 %s715_s16, 4  ;;  %s1151_s29 = int_to_ptr.hbm [resolvable:$true] %s1150_s29 }
 0x4e1   : > { %s1152_s22 = scalar_lea.hbm %s1151_s29, 4  ;;  %p1157_p9 = scmp.lt.s32.totalorder %s1151_s29, %s1816_s2 }
 0x4e2   : > { %p1153_p8 = scmp.ne.s32.totalorder %s1151_s29, %s1152_s22  ;;  %p1158_p12 = scmp.lt.s32.totalorder %s1156_s4, %s1152_s22 }
 0x4e4   : > { %p1154_p5 = pnand %p1153_p8, %p1544_p1  ;;  %p1159_p4 = por %p1158_p12, %p1157_p9 }
 0x4e6   : > { %p1155_p6 = pneg %p1154_p5 }
 0x4e8   : > { %p1160_p10 = pnand %p1159_p4, %p1155_p6 }
 0x4ea   : > { %1163 = shalt.err (!%p1160_p10)
}
 0x4eb   : > { %895 = dma.vmem_to_hbm [thread:$0]  (%p1544_p1), %s713_s7, 64, %s715_s16, %s693_s14  }
 0x4ec PF: > { %p909_p7 = scmp.ge.s32.totalorder %s1302_s8, 2  ;;  %s726_s13 = sand.u32 1, %s1242_s18  }
 0x4ed   : > { %s727_s5 = scalar_lea.sflag [#allocation9], %s726_s13 }
 0x4ee   : > { %p905_p11 = pnand %p909_p7, %p1553_p0 }
 0x4f0   : > { %p906_p13 = pneg %p905_p11 }
 0x4f2   : > { %1237 = dma.done.wait (%p906_p13), %s727_s5, 64  }
 0x4f3   : > { %1239 = vsyncadd (%p906_p13), %s727_s5, 4294967232  ;;  %s24_s8 = sadd.s32 1, %s1302_s8   ;;  %s1818_s24 = sld [smem:[#allocation16_spill]] }
 0x4f4   : > { %p1688_p2 = scmp.ge.s32.totalorder %s24_s8, 34   ;;  %s1819_s27 = smov %s1527_s21 }
 0x4f5   : > { %s1820_s7 = sld [smem:[#allocation17_spill]]  ;;  %s1828_s18 = smov %s1246_s19 }
 0x4f6   : > { %s1821_s3 = sld [smem:[#allocation28_spill]]  ;;  %s1830_s19 = smov %s1250_s20 }
 0x4f7   : > { %s1822_s10 = sld [smem:[#allocation21_spill]]  ;;  %s1831_s20 = smov %s1551_s12 }
 0x4f8   : > { %s1823_s28 = sld [smem:[#allocation22_spill]]  ;;  %s1833_s22 = smov %s1262_s23 }
 0x4f9   : > { %s1824_s29 = sld [smem:[#allocation23_spill]]  ;;  %s1832_s21 = smov %s1818_s24 }
 0x4fa   : > { %s1825_s30 = sld [smem:[#allocation24_spill]]  ;;  %s1834_s23 = smov %s1819_s27 }
 0x4fb   : > { %s1826_s17 = sld [smem:[#allocation25_spill]]  ;;  %s1835_s24 = smov %s1820_s7 }
 0x4fc   : > { %s1827_s1 = sld [smem:[#allocation26_spill]]  ;;  %s1836_s25 = smov %s1274_s26 }
 0x4fd   : > { %s1837_s26 = smov %s1821_s3  ;;  %s1838_s27 = smov %s1822_s10 }
 0x4fe   :  { %23 = sbr.rel (!%p1688_p2) target bundleno = 19 (0x13), region = 156 }
 0x501   : > { %s1839_s6 = smov %s1826_s17 }
 0x502   : > { %s1840_s7 = smov %s1827_s1 }
 0x503   :  { %733 = vsyncpa [#allocation8], 1 }
 0x504   :  { %735 = vsyncpa [#allocation8 + $0x1], 1 }
 0x505   :  { %736 = vsyncpa [#allocation11], 1 }
 0x506   :  { %738 = vsyncpa [#allocation11 + $0x1], 1 }
 0x507   :  { %739 = vsyncpa [#allocation9], 1 }
 0x508   :  { %741 = vsyncpa [#allocation9 + $0x1], 1 }

</bundles_post_ra>
